<compile_context>
chip_gen: v7x
topology: tpu7x:2x2x1
jax: 0.10.0
libtpu: 0.0.40
codegen_flags: <defaults>
</compile_context>

<pallas_src>
import functools

import jax
import jax.numpy as jnp
from jax.experimental import pallas as pl
from jax.experimental.pallas import tpu as pltpu  # noqa: F401  (kept per template)

# ---- model hyperparameters (small, consistent with the module) --------------
SEQ_LEN = 8
BATCH = 2
INPUT_SIZE = 4
HIDDEN = 32
NUM_LAYERS = 2          # kernel below is written for 2 stacked LSTM layers
LIN1_OUT = 128
LIN2_OUT = 1
BATCH_PAD = 8           # pad batch to a full sublane tile


def _gate_update(gates, c, hidden):
    """Gate activations + state update, PyTorch gate order i, f, g, o (bias-free).

    The g-gate preactivation arrives pre-scaled by 2 (done once in prepare_params),
    so a single full-width sigmoid covers all four gates:
        tanh(x) = 2*sigmoid(2x) - 1.
    """
    sg = jax.nn.sigmoid(gates)                       # one (B, 4H) EUP call
    i = sg[:, 0 * hidden:1 * hidden]
    f = sg[:, 1 * hidden:2 * hidden]
    g = 2.0 * sg[:, 2 * hidden:3 * hidden] - 1.0     # == tanh(true g preactivation)
    o = sg[:, 3 * hidden:4 * hidden]
    c_new = f * c + i * g
    h_new = o * jnp.tanh(c_new)                      # one (B, H) EUP call
    return h_new, c_new


def _stock_predictor_kernel(
    seq_len, batch_p, hidden,
    x_ref,       # (S*Bp, I)     time-major, batch zero-padded to Bp
    wih0t_ref,   # (I, 4H)       W_ih0^T  (g columns pre-scaled by 2)
    whh0t_ref,   # (H, 4H)       W_hh0^T  (g columns pre-scaled by 2)
    wih1t_ref,   # (H, 4H)       W_ih1^T  (g columns pre-scaled by 2)
    whh1t_ref,   # (H, 4H)       W_hh1^T  (g columns pre-scaled by 2)
    wl1_ref,     # (128, H)      raw PyTorch layout (used as LHS of transposed head)
    wl2_ref,     # (1, 128)      raw PyTorch layout
    o_ref,       # (1, S*Bp)     lane-major output row
):
    # Layer-0 input contribution for every timestep in ONE matmul (off the serial chain).
    xg0 = jnp.dot(x_ref[...], wih0t_ref[...],
                  preferred_element_type=jnp.float32)        # (S*Bp, 4H)
    whh0t = whh0t_ref[...]
    wih1t = wih1t_ref[...]
    whh1t = whh1t_ref[...]

    h0 = jnp.zeros((batch_p, hidden), jnp.float32)
    c0 = jnp.zeros((batch_p, hidden), jnp.float32)
    h1 = jnp.zeros((batch_p, hidden), jnp.float32)
    c1 = jnp.zeros((batch_p, hidden), jnp.float32)

    h1_steps = []
    # Fully unrolled static recurrence; all state lives in vregs.
    for t in range(seq_len):
        # layer 0: precomputed input gates (full-sublane-tile slice) + recurrent matmul
        g0 = xg0[t * batch_p:(t + 1) * batch_p, :] + jnp.dot(
            h0, whh0t, preferred_element_type=jnp.float32)
        h0, c0 = _gate_update(g0, c0, hidden)

        # layer 1: two separate dots (no lane concat on the critical path)
        g1 = (jnp.dot(h0, wih1t, preferred_element_type=jnp.float32)
              + jnp.dot(h1, whh1t, preferred_element_type=jnp.float32))
        h1, c1 = _gate_update(g1, c1, hidden)

        h1_steps.append(h1)                                   # stays in vregs

    # Hoisted head, run once in lane-major (transposed) form.
    h1_all = jnp.concatenate(h1_steps, axis=0)                # (S*Bp, H)
    h1_all_t = h1_all.T                                       # (H, S*Bp) — one XLU transpose
    z_t = jnp.tanh(jnp.dot(wl1_ref[...], h1_all_t,
                           preferred_element_type=jnp.float32))   # (128, S*Bp)
    y = jnp.tanh(jnp.dot(wl2_ref[...], z_t,
                         preferred_element_type=jnp.float32))      # (1, S*Bp)
    o_ref[...] = y.astype(o_ref.dtype)                        # single lane-dense store


def prepare_params(params):
    """One-time weight layout prep (hoisted out of the per-call forward path):
    transpose LSTM weights and pre-scale the g-gate rows by 2 (single-sigmoid trick).
    The Linear weights are kept in their raw PyTorch layout (the head runs transposed).
    """
    w_ih0, w_hh0, w_ih1, w_hh1, w_l1, w_l2 = params

    def scale_g(w):  # w: (4H, fan_in); g-gate rows are 2H:3H
        return w.at[2 * HIDDEN:3 * HIDDEN, :].multiply(2.0)

    wih0t = scale_g(w_ih0).T        # (I, 4H)
    whh0t = scale_g(w_hh0).T        # (H, 4H)
    wih1t = scale_g(w_ih1).T        # (H, 4H)
    whh1t = scale_g(w_hh1).T        # (H, 4H)
    return (wih0t, whh0t, wih1t, whh1t, w_l1, w_l2)


@jax.jit
def stock_predictor_forward(x, prep_params):
    """x: (seq_len, batch, input_size) float32 -> (seq_len, batch, 1)."""
    seq_len, batch, input_size = x.shape
    wih0t, whh0t, wih1t, whh1t, w_l1, w_l2 = prep_params

    bp = BATCH_PAD
    # Zero-pad batch to a full sublane tile; padded rows stay identically zero
    # through the bias-free LSTM and are dropped after the kernel.
    x_pad = jnp.pad(x, ((0, 0), (0, bp - batch), (0, 0)))
    x_flat = x_pad.reshape(seq_len * bp, input_size)

    kernel = functools.partial(_stock_predictor_kernel, seq_len, bp, HIDDEN)

    out_row = pl.pallas_call(
        kernel,
        out_shape=jax.ShapeDtypeStruct((1, seq_len * bp), jnp.float32),
        # No grid: everything (<0.2 MiB) lives in VMEM as full-array blocks.
    )(x_flat, wih0t, whh0t, wih1t, whh1t, w_l1, w_l2)

    # (1, S*Bp) -> (S, Bp, 1) -> drop padded batch rows.
    return out_row.reshape(seq_len, bp, LIN2_OUT)[:, :batch, :]


# ---------------- pure-JAX reference (for correctness check) -----------------
def _lstm_cell_ref(x_t, h, c, w_ih, w_hh, hidden):
    gates = x_t @ w_ih.T + h @ w_hh.T
    i = jax.nn.sigmoid(gates[:, 0 * hidden:1 * hidden])
    f = jax.nn.sigmoid(gates[:, 1 * hidden:2 * hidden])
    g = jnp.tanh(gates[:, 2 * hidden:3 * hidden])
    o = jax.nn.sigmoid(gates[:, 3 * hidden:4 * hidden])
    c_new = f * c + i * g
    h_new = o * jnp.tanh(c_new)
    return h_new, c_new


def reference_forward(x, params):
    w_ih0, w_hh0, w_ih1, w_hh1, w_l1, w_l2 = params
    seq_len, batch, _ = x.shape
    h = [jnp.zeros((batch, HIDDEN), jnp.float32) for _ in range(NUM_LAYERS)]
    c = [jnp.zeros((batch, HIDDEN), jnp.float32) for _ in range(NUM_LAYERS)]
    outs = []
    for t in range(seq_len):
        h[0], c[0] = _lstm_cell_ref(x[t], h[0], c[0], w_ih0, w_hh0, HIDDEN)
        h[1], c[1] = _lstm_cell_ref(h[0], h[1], c[1], w_ih1, w_hh1, HIDDEN)
        z = jnp.tanh(h[1] @ w_l1.T)
        y = jnp.tanh(z @ w_l2.T)
        outs.append(y)
    return jnp.stack(outs, axis=0)


def init_params(key):
    """Deterministic init mimicking PyTorch defaults (uniform +-1/sqrt(fan))."""
    ks = jax.random.split(key, 6)
    s_lstm = 1.0 / jnp.sqrt(HIDDEN)
    s_l1 = 1.0 / jnp.sqrt(HIDDEN)
    s_l2 = 1.0 / jnp.sqrt(LIN1_OUT)
    u = lambda k, shape, s: jax.random.uniform(k, shape, jnp.float32, -s, s)
    w_ih0 = u(ks[0], (4 * HIDDEN, INPUT_SIZE), s_lstm)
    w_hh0 = u(ks[1], (4 * HIDDEN, HIDDEN), s_lstm)
    w_ih1 = u(ks[2], (4 * HIDDEN, HIDDEN), s_lstm)
    w_hh1 = u(ks[3], (4 * HIDDEN, HIDDEN), s_lstm)
    w_l1 = u(ks[4], (LIN1_OUT, HIDDEN), s_l1)
    w_l2 = u(ks[5], (LIN2_OUT, LIN1_OUT), s_l2)
    return (w_ih0, w_hh0, w_ih1, w_hh1, w_l1, w_l2)


if __name__ == "__main__":
    key = jax.random.PRNGKey(0)
    k_x, k_p = jax.random.split(key)
    x = jax.random.normal(k_x, (SEQ_LEN, BATCH, INPUT_SIZE), jnp.float32)
    params = init_params(k_p)

    # One-time layout prep, hoisted out of the per-call forward path.
    prep = prepare_params(params)
    prep = jax.block_until_ready(prep)

    out = stock_predictor_forward(x, prep)
    out = jax.block_until_ready(out)

    ref = reference_forward(x, params)
    assert out.shape == (SEQ_LEN, BATCH, LIN2_OUT), out.shape
    assert jnp.allclose(out, ref, atol=1e-4, rtol=1e-4), (
        f"max abs err {jnp.max(jnp.abs(out - ref))}"
    )
    print("KERNEL_OK")
</pallas_src>

<mosaic_0001>
module attributes {stable_mosaic.version = 11 : i64} {
  func.func @_stock_predictor_kernel(%arg0: memref<64x4xf32, #tpu.memory_space<vmem>>, %arg1: memref<4x128xf32, #tpu.memory_space<vmem>>, %arg2: memref<32x128xf32, #tpu.memory_space<vmem>>, %arg3: memref<32x128xf32, #tpu.memory_space<vmem>>, %arg4: memref<32x128xf32, #tpu.memory_space<vmem>>, %arg5: memref<128x32xf32, #tpu.memory_space<vmem>>, %arg6: memref<1x128xf32, #tpu.memory_space<vmem>>, %arg7: memref<1x64xf32, #tpu.memory_space<vmem>>) attributes {dimension_semantics = [], scalar_prefetch = 0 : i64, scratch_operands = 0 : i64, tpu.core_type = #tpu.core_type<tc>} {
    %c0 = arith.constant 0 : index
    %c0_0 = arith.constant 0 : index
    %0 = vector.load %arg0[%c0, %c0_0] : memref<64x4xf32, #tpu.memory_space<vmem>>, vector<64x4xf32>
    %c0_1 = arith.constant 0 : index
    %c0_2 = arith.constant 0 : index
    %1 = vector.load %arg1[%c0_1, %c0_2] : memref<4x128xf32, #tpu.memory_space<vmem>>, vector<4x128xf32>
    %cst = arith.constant dense<0.000000e+00> : vector<64x128xf32>
    %2 = tpu.matmul %0, %1, %cst {dimension_numbers = #tpu.dot_dimension_numbers<[1], [0], [0], [1], [0, 0, 1, 1], [], []>} : vector<64x4xf32>, vector<4x128xf32>, vector<64x128xf32> -> vector<64x128xf32>
    %c0_3 = arith.constant 0 : index
    %c0_4 = arith.constant 0 : index
    %3 = vector.load %arg2[%c0_3, %c0_4] : memref<32x128xf32, #tpu.memory_space<vmem>>, vector<32x128xf32>
    %c0_5 = arith.constant 0 : index
    %c0_6 = arith.constant 0 : index
    %4 = vector.load %arg3[%c0_5, %c0_6] : memref<32x128xf32, #tpu.memory_space<vmem>>, vector<32x128xf32>
    %c0_7 = arith.constant 0 : index
    %c0_8 = arith.constant 0 : index
    %5 = vector.load %arg4[%c0_7, %c0_8] : memref<32x128xf32, #tpu.memory_space<vmem>>, vector<32x128xf32>
    %cst_9 = arith.constant 0.000000e+00 : f32
    %6 = vector.broadcast %cst_9 : f32 to vector<8x32xf32>
    %cst_10 = arith.constant 0.000000e+00 : f32
    %7 = vector.broadcast %cst_10 : f32 to vector<8x32xf32>
    %cst_11 = arith.constant 0.000000e+00 : f32
    %8 = vector.broadcast %cst_11 : f32 to vector<8x32xf32>
    %cst_12 = arith.constant 0.000000e+00 : f32
    %9 = vector.broadcast %cst_12 : f32 to vector<8x32xf32>
    %10 = vector.extract_strided_slice %2 {offsets = [0, 0], sizes = [8, 128], strides = [1, 1]} : vector<64x128xf32> to vector<8x128xf32>
    %cst_13 = arith.constant dense<0.000000e+00> : vector<8x128xf32>
    %11 = tpu.matmul %6, %3, %cst_13 {dimension_numbers = #tpu.dot_dimension_numbers<[1], [0], [0], [1], [0, 0, 1, 1], [], []>} : vector<8x32xf32>, vector<32x128xf32>, vector<8x128xf32> -> vector<8x128xf32>
    %12 = arith.addf %10, %11 : vector<8x128xf32>
    %13 = arith.negf %12 : vector<8x128xf32>
    %14 = math.exp %13 : vector<8x128xf32>
    %cst_14 = arith.constant 1.000000e+00 : f32
    %15 = vector.broadcast %cst_14 : f32 to vector<8x128xf32>
    %16 = arith.addf %15, %14 : vector<8x128xf32>
    %17 = arith.divf %15, %16 : vector<8x128xf32>
    %18 = vector.extract_strided_slice %17 {offsets = [0, 0], sizes = [8, 32], strides = [1, 1]} : vector<8x128xf32> to vector<8x32xf32>
    %19 = vector.extract_strided_slice %17 {offsets = [0, 32], sizes = [8, 32], strides = [1, 1]} : vector<8x128xf32> to vector<8x32xf32>
    %20 = vector.extract_strided_slice %17 {offsets = [0, 64], sizes = [8, 32], strides = [1, 1]} : vector<8x128xf32> to vector<8x32xf32>
    %cst_15 = arith.constant 2.000000e+00 : f32
    %21 = vector.broadcast %cst_15 : f32 to vector<8x32xf32>
    %22 = arith.mulf %21, %20 : vector<8x32xf32>
    %cst_16 = arith.constant 1.000000e+00 : f32
    %23 = vector.broadcast %cst_16 : f32 to vector<8x32xf32>
    %24 = arith.subf %22, %23 : vector<8x32xf32>
    %25 = vector.extract_strided_slice %17 {offsets = [0, 96], sizes = [8, 32], strides = [1, 1]} : vector<8x128xf32> to vector<8x32xf32>
    %26 = arith.mulf %19, %7 : vector<8x32xf32>
    %27 = arith.mulf %18, %24 : vector<8x32xf32>
    %28 = arith.addf %26, %27 : vector<8x32xf32>
    %29 = math.tanh %28 : vector<8x32xf32>
    %30 = arith.mulf %25, %29 : vector<8x32xf32>
    %cst_17 = arith.constant dense<0.000000e+00> : vector<8x128xf32>
    %31 = tpu.matmul %30, %4, %cst_17 {dimension_numbers = #tpu.dot_dimension_numbers<[1], [0], [0], [1], [0, 0, 1, 1], [], []>} : vector<8x32xf32>, vector<32x128xf32>, vector<8x128xf32> -> vector<8x128xf32>
    %cst_18 = arith.constant dense<0.000000e+00> : vector<8x128xf32>
    %32 = tpu.matmul %8, %5, %cst_18 {dimension_numbers = #tpu.dot_dimension_numbers<[1], [0], [0], [1], [0, 0, 1, 1], [], []>} : vector<8x32xf32>, vector<32x128xf32>, vector<8x128xf32> -> vector<8x128xf32>
    %33 = arith.addf %31, %32 : vector<8x128xf32>
    %34 = arith.negf %33 : vector<8x128xf32>
    %35 = math.exp %34 : vector<8x128xf32>
    %cst_19 = arith.constant 1.000000e+00 : f32
    %36 = vector.broadcast %cst_19 : f32 to vector<8x128xf32>
    %37 = arith.addf %36, %35 : vector<8x128xf32>
    %38 = arith.divf %36, %37 : vector<8x128xf32>
    %39 = vector.extract_strided_slice %38 {offsets = [0, 0], sizes = [8, 32], strides = [1, 1]} : vector<8x128xf32> to vector<8x32xf32>
    %40 = vector.extract_strided_slice %38 {offsets = [0, 32], sizes = [8, 32], strides = [1, 1]} : vector<8x128xf32> to vector<8x32xf32>
    %41 = vector.extract_strided_slice %38 {offsets = [0, 64], sizes = [8, 32], strides = [1, 1]} : vector<8x128xf32> to vector<8x32xf32>
    %cst_20 = arith.constant 2.000000e+00 : f32
    %42 = vector.broadcast %cst_20 : f32 to vector<8x32xf32>
    %43 = arith.mulf %42, %41 : vector<8x32xf32>
    %cst_21 = arith.constant 1.000000e+00 : f32
    %44 = vector.broadcast %cst_21 : f32 to vector<8x32xf32>
    %45 = arith.subf %43, %44 : vector<8x32xf32>
    %46 = vector.extract_strided_slice %38 {offsets = [0, 96], sizes = [8, 32], strides = [1, 1]} : vector<8x128xf32> to vector<8x32xf32>
    %47 = arith.mulf %40, %9 : vector<8x32xf32>
    %48 = arith.mulf %39, %45 : vector<8x32xf32>
    %49 = arith.addf %47, %48 : vector<8x32xf32>
    %50 = math.tanh %49 : vector<8x32xf32>
    %51 = arith.mulf %46, %50 : vector<8x32xf32>
    %52 = vector.extract_strided_slice %2 {offsets = [8, 0], sizes = [8, 128], strides = [1, 1]} : vector<64x128xf32> to vector<8x128xf32>
    %cst_22 = arith.constant dense<0.000000e+00> : vector<8x128xf32>
    %53 = tpu.matmul %30, %3, %cst_22 {dimension_numbers = #tpu.dot_dimension_numbers<[1], [0], [0], [1], [0, 0, 1, 1], [], []>} : vector<8x32xf32>, vector<32x128xf32>, vector<8x128xf32> -> vector<8x128xf32>
    %54 = arith.addf %52, %53 : vector<8x128xf32>
    %55 = arith.negf %54 : vector<8x128xf32>
    %56 = math.exp %55 : vector<8x128xf32>
    %cst_23 = arith.constant 1.000000e+00 : f32
    %57 = vector.broadcast %cst_23 : f32 to vector<8x128xf32>
    %58 = arith.addf %57, %56 : vector<8x128xf32>
    %59 = arith.divf %57, %58 : vector<8x128xf32>
    %60 = vector.extract_strided_slice %59 {offsets = [0, 0], sizes = [8, 32], strides = [1, 1]} : vector<8x128xf32> to vector<8x32xf32>
    %61 = vector.extract_strided_slice %59 {offsets = [0, 32], sizes = [8, 32], strides = [1, 1]} : vector<8x128xf32> to vector<8x32xf32>
    %62 = vector.extract_strided_slice %59 {offsets = [0, 64], sizes = [8, 32], strides = [1, 1]} : vector<8x128xf32> to vector<8x32xf32>
    %cst_24 = arith.constant 2.000000e+00 : f32
    %63 = vector.broadcast %cst_24 : f32 to vector<8x32xf32>
    %64 = arith.mulf %63, %62 : vector<8x32xf32>
    %cst_25 = arith.constant 1.000000e+00 : f32
    %65 = vector.broadcast %cst_25 : f32 to vector<8x32xf32>
    %66 = arith.subf %64, %65 : vector<8x32xf32>
    %67 = vector.extract_strided_slice %59 {offsets = [0, 96], sizes = [8, 32], strides = [1, 1]} : vector<8x128xf32> to vector<8x32xf32>
    %68 = arith.mulf %61, %28 : vector<8x32xf32>
    %69 = arith.mulf %60, %66 : vector<8x32xf32>
    %70 = arith.addf %68, %69 : vector<8x32xf32>
    %71 = math.tanh %70 : vector<8x32xf32>
    %72 = arith.mulf %67, %71 : vector<8x32xf32>
    %cst_26 = arith.constant dense<0.000000e+00> : vector<8x128xf32>
    %73 = tpu.matmul %72, %4, %cst_26 {dimension_numbers = #tpu.dot_dimension_numbers<[1], [0], [0], [1], [0, 0, 1, 1], [], []>} : vector<8x32xf32>, vector<32x128xf32>, vector<8x128xf32> -> vector<8x128xf32>
    %cst_27 = arith.constant dense<0.000000e+00> : vector<8x128xf32>
    %74 = tpu.matmul %51, %5, %cst_27 {dimension_numbers = #tpu.dot_dimension_numbers<[1], [0], [0], [1], [0, 0, 1, 1], [], []>} : vector<8x32xf32>, vector<32x128xf32>, vector<8x128xf32> -> vector<8x128xf32>
    %75 = arith.addf %73, %74 : vector<8x128xf32>
    %76 = arith.negf %75 : vector<8x128xf32>
    %77 = math.exp %76 : vector<8x128xf32>
    %cst_28 = arith.constant 1.000000e+00 : f32
    %78 = vector.broadcast %cst_28 : f32 to vector<8x128xf32>
    %79 = arith.addf %78, %77 : vector<8x128xf32>
    %80 = arith.divf %78, %79 : vector<8x128xf32>
    %81 = vector.extract_strided_slice %80 {offsets = [0, 0], sizes = [8, 32], strides = [1, 1]} : vector<8x128xf32> to vector<8x32xf32>
    %82 = vector.extract_strided_slice %80 {offsets = [0, 32], sizes = [8, 32], strides = [1, 1]} : vector<8x128xf32> to vector<8x32xf32>
    %83 = vector.extract_strided_slice %80 {offsets = [0, 64], sizes = [8, 32], strides = [1, 1]} : vector<8x128xf32> to vector<8x32xf32>
    %cst_29 = arith.constant 2.000000e+00 : f32
    %84 = vector.broadcast %cst_29 : f32 to vector<8x32xf32>
    %85 = arith.mulf %84, %83 : vector<8x32xf32>
    %cst_30 = arith.constant 1.000000e+00 : f32
    %86 = vector.broadcast %cst_30 : f32 to vector<8x32xf32>
    %87 = arith.subf %85, %86 : vector<8x32xf32>
    %88 = vector.extract_strided_slice %80 {offsets = [0, 96], sizes = [8, 32], strides = [1, 1]} : vector<8x128xf32> to vector<8x32xf32>
    %89 = arith.mulf %82, %49 : vector<8x32xf32>
    %90 = arith.mulf %81, %87 : vector<8x32xf32>
    %91 = arith.addf %89, %90 : vector<8x32xf32>
    %92 = math.tanh %91 : vector<8x32xf32>
    %93 = arith.mulf %88, %92 : vector<8x32xf32>
    %94 = vector.extract_strided_slice %2 {offsets = [16, 0], sizes = [8, 128], strides = [1, 1]} : vector<64x128xf32> to vector<8x128xf32>
    %cst_31 = arith.constant dense<0.000000e+00> : vector<8x128xf32>
    %95 = tpu.matmul %72, %3, %cst_31 {dimension_numbers = #tpu.dot_dimension_numbers<[1], [0], [0], [1], [0, 0, 1, 1], [], []>} : vector<8x32xf32>, vector<32x128xf32>, vector<8x128xf32> -> vector<8x128xf32>
    %96 = arith.addf %94, %95 : vector<8x128xf32>
    %97 = arith.negf %96 : vector<8x128xf32>
    %98 = math.exp %97 : vector<8x128xf32>
    %cst_32 = arith.constant 1.000000e+00 : f32
    %99 = vector.broadcast %cst_32 : f32 to vector<8x128xf32>
    %100 = arith.addf %99, %98 : vector<8x128xf32>
    %101 = arith.divf %99, %100 : vector<8x128xf32>
    %102 = vector.extract_strided_slice %101 {offsets = [0, 0], sizes = [8, 32], strides = [1, 1]} : vector<8x128xf32> to vector<8x32xf32>
    %103 = vector.extract_strided_slice %101 {offsets = [0, 32], sizes = [8, 32], strides = [1, 1]} : vector<8x128xf32> to vector<8x32xf32>
    %104 = vector.extract_strided_slice %101 {offsets = [0, 64], sizes = [8, 32], strides = [1, 1]} : vector<8x128xf32> to vector<8x32xf32>
    %cst_33 = arith.constant 2.000000e+00 : f32
    %105 = vector.broadcast %cst_33 : f32 to vector<8x32xf32>
    %106 = arith.mulf %105, %104 : vector<8x32xf32>
    %cst_34 = arith.constant 1.000000e+00 : f32
    %107 = vector.broadcast %cst_34 : f32 to vector<8x32xf32>
    %108 = arith.subf %106, %107 : vector<8x32xf32>
    %109 = vector.extract_strided_slice %101 {offsets = [0, 96], sizes = [8, 32], strides = [1, 1]} : vector<8x128xf32> to vector<8x32xf32>
    %110 = arith.mulf %103, %70 : vector<8x32xf32>
    %111 = arith.mulf %102, %108 : vector<8x32xf32>
    %112 = arith.addf %110, %111 : vector<8x32xf32>
    %113 = math.tanh %112 : vector<8x32xf32>
    %114 = arith.mulf %109, %113 : vector<8x32xf32>
    %cst_35 = arith.constant dense<0.000000e+00> : vector<8x128xf32>
    %115 = tpu.matmul %114, %4, %cst_35 {dimension_numbers = #tpu.dot_dimension_numbers<[1], [0], [0], [1], [0, 0, 1, 1], [], []>} : vector<8x32xf32>, vector<32x128xf32>, vector<8x128xf32> -> vector<8x128xf32>
    %cst_36 = arith.constant dense<0.000000e+00> : vector<8x128xf32>
    %116 = tpu.matmul %93, %5, %cst_36 {dimension_numbers = #tpu.dot_dimension_numbers<[1], [0], [0], [1], [0, 0, 1, 1], [], []>} : vector<8x32xf32>, vector<32x128xf32>, vector<8x128xf32> -> vector<8x128xf32>
    %117 = arith.addf %115, %116 : vector<8x128xf32>
    %118 = arith.negf %117 : vector<8x128xf32>
    %119 = math.exp %118 : vector<8x128xf32>
    %cst_37 = arith.constant 1.000000e+00 : f32
    %120 = vector.broadcast %cst_37 : f32 to vector<8x128xf32>
    %121 = arith.addf %120, %119 : vector<8x128xf32>
    %122 = arith.divf %120, %121 : vector<8x128xf32>
    %123 = vector.extract_strided_slice %122 {offsets = [0, 0], sizes = [8, 32], strides = [1, 1]} : vector<8x128xf32> to vector<8x32xf32>
    %124 = vector.extract_strided_slice %122 {offsets = [0, 32], sizes = [8, 32], strides = [1, 1]} : vector<8x128xf32> to vector<8x32xf32>
    %125 = vector.extract_strided_slice %122 {offsets = [0, 64], sizes = [8, 32], strides = [1, 1]} : vector<8x128xf32> to vector<8x32xf32>
    %cst_38 = arith.constant 2.000000e+00 : f32
    %126 = vector.broadcast %cst_38 : f32 to vector<8x32xf32>
    %127 = arith.mulf %126, %125 : vector<8x32xf32>
    %cst_39 = arith.constant 1.000000e+00 : f32
    %128 = vector.broadcast %cst_39 : f32 to vector<8x32xf32>
    %129 = arith.subf %127, %128 : vector<8x32xf32>
    %130 = vector.extract_strided_slice %122 {offsets = [0, 96], sizes = [8, 32], strides = [1, 1]} : vector<8x128xf32> to vector<8x32xf32>
    %131 = arith.mulf %124, %91 : vector<8x32xf32>
    %132 = arith.mulf %123, %129 : vector<8x32xf32>
    %133 = arith.addf %131, %132 : vector<8x32xf32>
    %134 = math.tanh %133 : vector<8x32xf32>
    %135 = arith.mulf %130, %134 : vector<8x32xf32>
    %136 = vector.extract_strided_slice %2 {offsets = [24, 0], sizes = [8, 128], strides = [1, 1]} : vector<64x128xf32> to vector<8x128xf32>
    %cst_40 = arith.constant dense<0.000000e+00> : vector<8x128xf32>
    %137 = tpu.matmul %114, %3, %cst_40 {dimension_numbers = #tpu.dot_dimension_numbers<[1], [0], [0], [1], [0, 0, 1, 1], [], []>} : vector<8x32xf32>, vector<32x128xf32>, vector<8x128xf32> -> vector<8x128xf32>
    %138 = arith.addf %136, %137 : vector<8x128xf32>
    %139 = arith.negf %138 : vector<8x128xf32>
    %140 = math.exp %139 : vector<8x128xf32>
    %cst_41 = arith.constant 1.000000e+00 : f32
    %141 = vector.broadcast %cst_41 : f32 to vector<8x128xf32>
    %142 = arith.addf %141, %140 : vector<8x128xf32>
    %143 = arith.divf %141, %142 : vector<8x128xf32>
    %144 = vector.extract_strided_slice %143 {offsets = [0, 0], sizes = [8, 32], strides = [1, 1]} : vector<8x128xf32> to vector<8x32xf32>
    %145 = vector.extract_strided_slice %143 {offsets = [0, 32], sizes = [8, 32], strides = [1, 1]} : vector<8x128xf32> to vector<8x32xf32>
    %146 = vector.extract_strided_slice %143 {offsets = [0, 64], sizes = [8, 32], strides = [1, 1]} : vector<8x128xf32> to vector<8x32xf32>
    %cst_42 = arith.constant 2.000000e+00 : f32
    %147 = vector.broadcast %cst_42 : f32 to vector<8x32xf32>
    %148 = arith.mulf %147, %146 : vector<8x32xf32>
    %cst_43 = arith.constant 1.000000e+00 : f32
    %149 = vector.broadcast %cst_43 : f32 to vector<8x32xf32>
    %150 = arith.subf %148, %149 : vector<8x32xf32>
    %151 = vector.extract_strided_slice %143 {offsets = [0, 96], sizes = [8, 32], strides = [1, 1]} : vector<8x128xf32> to vector<8x32xf32>
    %152 = arith.mulf %145, %112 : vector<8x32xf32>
    %153 = arith.mulf %144, %150 : vector<8x32xf32>
    %154 = arith.addf %152, %153 : vector<8x32xf32>
    %155 = math.tanh %154 : vector<8x32xf32>
    %156 = arith.mulf %151, %155 : vector<8x32xf32>
    %cst_44 = arith.constant dense<0.000000e+00> : vector<8x128xf32>
    %157 = tpu.matmul %156, %4, %cst_44 {dimension_numbers = #tpu.dot_dimension_numbers<[1], [0], [0], [1], [0, 0, 1, 1], [], []>} : vector<8x32xf32>, vector<32x128xf32>, vector<8x128xf32> -> vector<8x128xf32>
    %cst_45 = arith.constant dense<0.000000e+00> : vector<8x128xf32>
    %158 = tpu.matmul %135, %5, %cst_45 {dimension_numbers = #tpu.dot_dimension_numbers<[1], [0], [0], [1], [0, 0, 1, 1], [], []>} : vector<8x32xf32>, vector<32x128xf32>, vector<8x128xf32> -> vector<8x128xf32>
    %159 = arith.addf %157, %158 : vector<8x128xf32>
    %160 = arith.negf %159 : vector<8x128xf32>
    %161 = math.exp %160 : vector<8x128xf32>
    %cst_46 = arith.constant 1.000000e+00 : f32
    %162 = vector.broadcast %cst_46 : f32 to vector<8x128xf32>
    %163 = arith.addf %162, %161 : vector<8x128xf32>
    %164 = arith.divf %162, %163 : vector<8x128xf32>
    %165 = vector.extract_strided_slice %164 {offsets = [0, 0], sizes = [8, 32], strides = [1, 1]} : vector<8x128xf32> to vector<8x32xf32>
    %166 = vector.extract_strided_slice %164 {offsets = [0, 32], sizes = [8, 32], strides = [1, 1]} : vector<8x128xf32> to vector<8x32xf32>
    %167 = vector.extract_strided_slice %164 {offsets = [0, 64], sizes = [8, 32], strides = [1, 1]} : vector<8x128xf32> to vector<8x32xf32>
    %cst_47 = arith.constant 2.000000e+00 : f32
    %168 = vector.broadcast %cst_47 : f32 to vector<8x32xf32>
    %169 = arith.mulf %168, %167 : vector<8x32xf32>
    %cst_48 = arith.constant 1.000000e+00 : f32
    %170 = vector.broadcast %cst_48 : f32 to vector<8x32xf32>
    %171 = arith.subf %169, %170 : vector<8x32xf32>
    %172 = vector.extract_strided_slice %164 {offsets = [0, 96], sizes = [8, 32], strides = [1, 1]} : vector<8x128xf32> to vector<8x32xf32>
    %173 = arith.mulf %166, %133 : vector<8x32xf32>
    %174 = arith.mulf %165, %171 : vector<8x32xf32>
    %175 = arith.addf %173, %174 : vector<8x32xf32>
    %176 = math.tanh %175 : vector<8x32xf32>
    %177 = arith.mulf %172, %176 : vector<8x32xf32>
    %178 = vector.extract_strided_slice %2 {offsets = [32, 0], sizes = [8, 128], strides = [1, 1]} : vector<64x128xf32> to vector<8x128xf32>
    %cst_49 = arith.constant dense<0.000000e+00> : vector<8x128xf32>
    %179 = tpu.matmul %156, %3, %cst_49 {dimension_numbers = #tpu.dot_dimension_numbers<[1], [0], [0], [1], [0, 0, 1, 1], [], []>} : vector<8x32xf32>, vector<32x128xf32>, vector<8x128xf32> -> vector<8x128xf32>
    %180 = arith.addf %178, %179 : vector<8x128xf32>
    %181 = arith.negf %180 : vector<8x128xf32>
    %182 = math.exp %181 : vector<8x128xf32>
    %cst_50 = arith.constant 1.000000e+00 : f32
    %183 = vector.broadcast %cst_50 : f32 to vector<8x128xf32>
    %184 = arith.addf %183, %182 : vector<8x128xf32>
    %185 = arith.divf %183, %184 : vector<8x128xf32>
    %186 = vector.extract_strided_slice %185 {offsets = [0, 0], sizes = [8, 32], strides = [1, 1]} : vector<8x128xf32> to vector<8x32xf32>
    %187 = vector.extract_strided_slice %185 {offsets = [0, 32], sizes = [8, 32], strides = [1, 1]} : vector<8x128xf32> to vector<8x32xf32>
    %188 = vector.extract_strided_slice %185 {offsets = [0, 64], sizes = [8, 32], strides = [1, 1]} : vector<8x128xf32> to vector<8x32xf32>
    %cst_51 = arith.constant 2.000000e+00 : f32
    %189 = vector.broadcast %cst_51 : f32 to vector<8x32xf32>
    %190 = arith.mulf %189, %188 : vector<8x32xf32>
    %cst_52 = arith.constant 1.000000e+00 : f32
    %191 = vector.broadcast %cst_52 : f32 to vector<8x32xf32>
    %192 = arith.subf %190, %191 : vector<8x32xf32>
    %193 = vector.extract_strided_slice %185 {offsets = [0, 96], sizes = [8, 32], strides = [1, 1]} : vector<8x128xf32> to vector<8x32xf32>
    %194 = arith.mulf %187, %154 : vector<8x32xf32>
    %195 = arith.mulf %186, %192 : vector<8x32xf32>
    %196 = arith.addf %194, %195 : vector<8x32xf32>
    %197 = math.tanh %196 : vector<8x32xf32>
    %198 = arith.mulf %193, %197 : vector<8x32xf32>
    %cst_53 = arith.constant dense<0.000000e+00> : vector<8x128xf32>
    %199 = tpu.matmul %198, %4, %cst_53 {dimension_numbers = #tpu.dot_dimension_numbers<[1], [0], [0], [1], [0, 0, 1, 1], [], []>} : vector<8x32xf32>, vector<32x128xf32>, vector<8x128xf32> -> vector<8x128xf32>
    %cst_54 = arith.constant dense<0.000000e+00> : vector<8x128xf32>
    %200 = tpu.matmul %177, %5, %cst_54 {dimension_numbers = #tpu.dot_dimension_numbers<[1], [0], [0], [1], [0, 0, 1, 1], [], []>} : vector<8x32xf32>, vector<32x128xf32>, vector<8x128xf32> -> vector<8x128xf32>
    %201 = arith.addf %199, %200 : vector<8x128xf32>
    %202 = arith.negf %201 : vector<8x128xf32>
    %203 = math.exp %202 : vector<8x128xf32>
    %cst_55 = arith.constant 1.000000e+00 : f32
    %204 = vector.broadcast %cst_55 : f32 to vector<8x128xf32>
    %205 = arith.addf %204, %203 : vector<8x128xf32>
    %206 = arith.divf %204, %205 : vector<8x128xf32>
    %207 = vector.extract_strided_slice %206 {offsets = [0, 0], sizes = [8, 32], strides = [1, 1]} : vector<8x128xf32> to vector<8x32xf32>
    %208 = vector.extract_strided_slice %206 {offsets = [0, 32], sizes = [8, 32], strides = [1, 1]} : vector<8x128xf32> to vector<8x32xf32>
    %209 = vector.extract_strided_slice %206 {offsets = [0, 64], sizes = [8, 32], strides = [1, 1]} : vector<8x128xf32> to vector<8x32xf32>
    %cst_56 = arith.constant 2.000000e+00 : f32
    %210 = vector.broadcast %cst_56 : f32 to vector<8x32xf32>
    %211 = arith.mulf %210, %209 : vector<8x32xf32>
    %cst_57 = arith.constant 1.000000e+00 : f32
    %212 = vector.broadcast %cst_57 : f32 to vector<8x32xf32>
    %213 = arith.subf %211, %212 : vector<8x32xf32>
    %214 = vector.extract_strided_slice %206 {offsets = [0, 96], sizes = [8, 32], strides = [1, 1]} : vector<8x128xf32> to vector<8x32xf32>
    %215 = arith.mulf %208, %175 : vector<8x32xf32>
    %216 = arith.mulf %207, %213 : vector<8x32xf32>
    %217 = arith.addf %215, %216 : vector<8x32xf32>
    %218 = math.tanh %217 : vector<8x32xf32>
    %219 = arith.mulf %214, %218 : vector<8x32xf32>
    %220 = vector.extract_strided_slice %2 {offsets = [40, 0], sizes = [8, 128], strides = [1, 1]} : vector<64x128xf32> to vector<8x128xf32>
    %cst_58 = arith.constant dense<0.000000e+00> : vector<8x128xf32>
    %221 = tpu.matmul %198, %3, %cst_58 {dimension_numbers = #tpu.dot_dimension_numbers<[1], [0], [0], [1], [0, 0, 1, 1], [], []>} : vector<8x32xf32>, vector<32x128xf32>, vector<8x128xf32> -> vector<8x128xf32>
    %222 = arith.addf %220, %221 : vector<8x128xf32>
    %223 = arith.negf %222 : vector<8x128xf32>
    %224 = math.exp %223 : vector<8x128xf32>
    %cst_59 = arith.constant 1.000000e+00 : f32
    %225 = vector.broadcast %cst_59 : f32 to vector<8x128xf32>
    %226 = arith.addf %225, %224 : vector<8x128xf32>
    %227 = arith.divf %225, %226 : vector<8x128xf32>
    %228 = vector.extract_strided_slice %227 {offsets = [0, 0], sizes = [8, 32], strides = [1, 1]} : vector<8x128xf32> to vector<8x32xf32>
    %229 = vector.extract_strided_slice %227 {offsets = [0, 32], sizes = [8, 32], strides = [1, 1]} : vector<8x128xf32> to vector<8x32xf32>
    %230 = vector.extract_strided_slice %227 {offsets = [0, 64], sizes = [8, 32], strides = [1, 1]} : vector<8x128xf32> to vector<8x32xf32>
    %cst_60 = arith.constant 2.000000e+00 : f32
    %231 = vector.broadcast %cst_60 : f32 to vector<8x32xf32>
    %232 = arith.mulf %231, %230 : vector<8x32xf32>
    %cst_61 = arith.constant 1.000000e+00 : f32
    %233 = vector.broadcast %cst_61 : f32 to vector<8x32xf32>
    %234 = arith.subf %232, %233 : vector<8x32xf32>
    %235 = vector.extract_strided_slice %227 {offsets = [0, 96], sizes = [8, 32], strides = [1, 1]} : vector<8x128xf32> to vector<8x32xf32>
    %236 = arith.mulf %229, %196 : vector<8x32xf32>
    %237 = arith.mulf %228, %234 : vector<8x32xf32>
    %238 = arith.addf %236, %237 : vector<8x32xf32>
    %239 = math.tanh %238 : vector<8x32xf32>
    %240 = arith.mulf %235, %239 : vector<8x32xf32>
    %cst_62 = arith.constant dense<0.000000e+00> : vector<8x128xf32>
    %241 = tpu.matmul %240, %4, %cst_62 {dimension_numbers = #tpu.dot_dimension_numbers<[1], [0], [0], [1], [0, 0, 1, 1], [], []>} : vector<8x32xf32>, vector<32x128xf32>, vector<8x128xf32> -> vector<8x128xf32>
    %cst_63 = arith.constant dense<0.000000e+00> : vector<8x128xf32>
    %242 = tpu.matmul %219, %5, %cst_63 {dimension_numbers = #tpu.dot_dimension_numbers<[1], [0], [0], [1], [0, 0, 1, 1], [], []>} : vector<8x32xf32>, vector<32x128xf32>, vector<8x128xf32> -> vector<8x128xf32>
    %243 = arith.addf %241, %242 : vector<8x128xf32>
    %244 = arith.negf %243 : vector<8x128xf32>
    %245 = math.exp %244 : vector<8x128xf32>
    %cst_64 = arith.constant 1.000000e+00 : f32
    %246 = vector.broadcast %cst_64 : f32 to vector<8x128xf32>
    %247 = arith.addf %246, %245 : vector<8x128xf32>
    %248 = arith.divf %246, %247 : vector<8x128xf32>
    %249 = vector.extract_strided_slice %248 {offsets = [0, 0], sizes = [8, 32], strides = [1, 1]} : vector<8x128xf32> to vector<8x32xf32>
    %250 = vector.extract_strided_slice %248 {offsets = [0, 32], sizes = [8, 32], strides = [1, 1]} : vector<8x128xf32> to vector<8x32xf32>
    %251 = vector.extract_strided_slice %248 {offsets = [0, 64], sizes = [8, 32], strides = [1, 1]} : vector<8x128xf32> to vector<8x32xf32>
    %cst_65 = arith.constant 2.000000e+00 : f32
    %252 = vector.broadcast %cst_65 : f32 to vector<8x32xf32>
    %253 = arith.mulf %252, %251 : vector<8x32xf32>
    %cst_66 = arith.constant 1.000000e+00 : f32
    %254 = vector.broadcast %cst_66 : f32 to vector<8x32xf32>
    %255 = arith.subf %253, %254 : vector<8x32xf32>
    %256 = vector.extract_strided_slice %248 {offsets = [0, 96], sizes = [8, 32], strides = [1, 1]} : vector<8x128xf32> to vector<8x32xf32>
    %257 = arith.mulf %250, %217 : vector<8x32xf32>
    %258 = arith.mulf %249, %255 : vector<8x32xf32>
    %259 = arith.addf %257, %258 : vector<8x32xf32>
    %260 = math.tanh %259 : vector<8x32xf32>
    %261 = arith.mulf %256, %260 : vector<8x32xf32>
    %262 = vector.extract_strided_slice %2 {offsets = [48, 0], sizes = [8, 128], strides = [1, 1]} : vector<64x128xf32> to vector<8x128xf32>
    %cst_67 = arith.constant dense<0.000000e+00> : vector<8x128xf32>
    %263 = tpu.matmul %240, %3, %cst_67 {dimension_numbers = #tpu.dot_dimension_numbers<[1], [0], [0], [1], [0, 0, 1, 1], [], []>} : vector<8x32xf32>, vector<32x128xf32>, vector<8x128xf32> -> vector<8x128xf32>
    %264 = arith.addf %262, %263 : vector<8x128xf32>
    %265 = arith.negf %264 : vector<8x128xf32>
    %266 = math.exp %265 : vector<8x128xf32>
    %cst_68 = arith.constant 1.000000e+00 : f32
    %267 = vector.broadcast %cst_68 : f32 to vector<8x128xf32>
    %268 = arith.addf %267, %266 : vector<8x128xf32>
    %269 = arith.divf %267, %268 : vector<8x128xf32>
    %270 = vector.extract_strided_slice %269 {offsets = [0, 0], sizes = [8, 32], strides = [1, 1]} : vector<8x128xf32> to vector<8x32xf32>
    %271 = vector.extract_strided_slice %269 {offsets = [0, 32], sizes = [8, 32], strides = [1, 1]} : vector<8x128xf32> to vector<8x32xf32>
    %272 = vector.extract_strided_slice %269 {offsets = [0, 64], sizes = [8, 32], strides = [1, 1]} : vector<8x128xf32> to vector<8x32xf32>
    %cst_69 = arith.constant 2.000000e+00 : f32
    %273 = vector.broadcast %cst_69 : f32 to vector<8x32xf32>
    %274 = arith.mulf %273, %272 : vector<8x32xf32>
    %cst_70 = arith.constant 1.000000e+00 : f32
    %275 = vector.broadcast %cst_70 : f32 to vector<8x32xf32>
    %276 = arith.subf %274, %275 : vector<8x32xf32>
    %277 = vector.extract_strided_slice %269 {offsets = [0, 96], sizes = [8, 32], strides = [1, 1]} : vector<8x128xf32> to vector<8x32xf32>
    %278 = arith.mulf %271, %238 : vector<8x32xf32>
    %279 = arith.mulf %270, %276 : vector<8x32xf32>
    %280 = arith.addf %278, %279 : vector<8x32xf32>
    %281 = math.tanh %280 : vector<8x32xf32>
    %282 = arith.mulf %277, %281 : vector<8x32xf32>
    %cst_71 = arith.constant dense<0.000000e+00> : vector<8x128xf32>
    %283 = tpu.matmul %282, %4, %cst_71 {dimension_numbers = #tpu.dot_dimension_numbers<[1], [0], [0], [1], [0, 0, 1, 1], [], []>} : vector<8x32xf32>, vector<32x128xf32>, vector<8x128xf32> -> vector<8x128xf32>
    %cst_72 = arith.constant dense<0.000000e+00> : vector<8x128xf32>
    %284 = tpu.matmul %261, %5, %cst_72 {dimension_numbers = #tpu.dot_dimension_numbers<[1], [0], [0], [1], [0, 0, 1, 1], [], []>} : vector<8x32xf32>, vector<32x128xf32>, vector<8x128xf32> -> vector<8x128xf32>
    %285 = arith.addf %283, %284 : vector<8x128xf32>
    %286 = arith.negf %285 : vector<8x128xf32>
    %287 = math.exp %286 : vector<8x128xf32>
    %cst_73 = arith.constant 1.000000e+00 : f32
    %288 = vector.broadcast %cst_73 : f32 to vector<8x128xf32>
    %289 = arith.addf %288, %287 : vector<8x128xf32>
    %290 = arith.divf %288, %289 : vector<8x128xf32>
    %291 = vector.extract_strided_slice %290 {offsets = [0, 0], sizes = [8, 32], strides = [1, 1]} : vector<8x128xf32> to vector<8x32xf32>
    %292 = vector.extract_strided_slice %290 {offsets = [0, 32], sizes = [8, 32], strides = [1, 1]} : vector<8x128xf32> to vector<8x32xf32>
    %293 = vector.extract_strided_slice %290 {offsets = [0, 64], sizes = [8, 32], strides = [1, 1]} : vector<8x128xf32> to vector<8x32xf32>
    %cst_74 = arith.constant 2.000000e+00 : f32
    %294 = vector.broadcast %cst_74 : f32 to vector<8x32xf32>
    %295 = arith.mulf %294, %293 : vector<8x32xf32>
    %cst_75 = arith.constant 1.000000e+00 : f32
    %296 = vector.broadcast %cst_75 : f32 to vector<8x32xf32>
    %297 = arith.subf %295, %296 : vector<8x32xf32>
    %298 = vector.extract_strided_slice %290 {offsets = [0, 96], sizes = [8, 32], strides = [1, 1]} : vector<8x128xf32> to vector<8x32xf32>
    %299 = arith.mulf %292, %259 : vector<8x32xf32>
    %300 = arith.mulf %291, %297 : vector<8x32xf32>
    %301 = arith.addf %299, %300 : vector<8x32xf32>
    %302 = math.tanh %301 : vector<8x32xf32>
    %303 = arith.mulf %298, %302 : vector<8x32xf32>
    %304 = vector.extract_strided_slice %2 {offsets = [56, 0], sizes = [8, 128], strides = [1, 1]} : vector<64x128xf32> to vector<8x128xf32>
    %cst_76 = arith.constant dense<0.000000e+00> : vector<8x128xf32>
    %305 = tpu.matmul %282, %3, %cst_76 {dimension_numbers = #tpu.dot_dimension_numbers<[1], [0], [0], [1], [0, 0, 1, 1], [], []>} : vector<8x32xf32>, vector<32x128xf32>, vector<8x128xf32> -> vector<8x128xf32>
    %306 = arith.addf %304, %305 : vector<8x128xf32>
    %307 = arith.negf %306 : vector<8x128xf32>
    %308 = math.exp %307 : vector<8x128xf32>
    %cst_77 = arith.constant 1.000000e+00 : f32
    %309 = vector.broadcast %cst_77 : f32 to vector<8x128xf32>
    %310 = arith.addf %309, %308 : vector<8x128xf32>
    %311 = arith.divf %309, %310 : vector<8x128xf32>
    %312 = vector.extract_strided_slice %311 {offsets = [0, 0], sizes = [8, 32], strides = [1, 1]} : vector<8x128xf32> to vector<8x32xf32>
    %313 = vector.extract_strided_slice %311 {offsets = [0, 32], sizes = [8, 32], strides = [1, 1]} : vector<8x128xf32> to vector<8x32xf32>
    %314 = vector.extract_strided_slice %311 {offsets = [0, 64], sizes = [8, 32], strides = [1, 1]} : vector<8x128xf32> to vector<8x32xf32>
    %cst_78 = arith.constant 2.000000e+00 : f32
    %315 = vector.broadcast %cst_78 : f32 to vector<8x32xf32>
    %316 = arith.mulf %315, %314 : vector<8x32xf32>
    %cst_79 = arith.constant 1.000000e+00 : f32
    %317 = vector.broadcast %cst_79 : f32 to vector<8x32xf32>
    %318 = arith.subf %316, %317 : vector<8x32xf32>
    %319 = vector.extract_strided_slice %311 {offsets = [0, 96], sizes = [8, 32], strides = [1, 1]} : vector<8x128xf32> to vector<8x32xf32>
    %320 = arith.mulf %313, %280 : vector<8x32xf32>
    %321 = arith.mulf %312, %318 : vector<8x32xf32>
    %322 = arith.addf %320, %321 : vector<8x32xf32>
    %323 = math.tanh %322 : vector<8x32xf32>
    %324 = arith.mulf %319, %323 : vector<8x32xf32>
    %cst_80 = arith.constant dense<0.000000e+00> : vector<8x128xf32>
    %325 = tpu.matmul %324, %4, %cst_80 {dimension_numbers = #tpu.dot_dimension_numbers<[1], [0], [0], [1], [0, 0, 1, 1], [], []>} : vector<8x32xf32>, vector<32x128xf32>, vector<8x128xf32> -> vector<8x128xf32>
    %cst_81 = arith.constant dense<0.000000e+00> : vector<8x128xf32>
    %326 = tpu.matmul %303, %5, %cst_81 {dimension_numbers = #tpu.dot_dimension_numbers<[1], [0], [0], [1], [0, 0, 1, 1], [], []>} : vector<8x32xf32>, vector<32x128xf32>, vector<8x128xf32> -> vector<8x128xf32>
    %327 = arith.addf %325, %326 : vector<8x128xf32>
    %328 = arith.negf %327 : vector<8x128xf32>
    %329 = math.exp %328 : vector<8x128xf32>
    %cst_82 = arith.constant 1.000000e+00 : f32
    %330 = vector.broadcast %cst_82 : f32 to vector<8x128xf32>
    %331 = arith.addf %330, %329 : vector<8x128xf32>
    %332 = arith.divf %330, %331 : vector<8x128xf32>
    %333 = vector.extract_strided_slice %332 {offsets = [0, 0], sizes = [8, 32], strides = [1, 1]} : vector<8x128xf32> to vector<8x32xf32>
    %334 = vector.extract_strided_slice %332 {offsets = [0, 32], sizes = [8, 32], strides = [1, 1]} : vector<8x128xf32> to vector<8x32xf32>
    %335 = vector.extract_strided_slice %332 {offsets = [0, 64], sizes = [8, 32], strides = [1, 1]} : vector<8x128xf32> to vector<8x32xf32>
    %cst_83 = arith.constant 2.000000e+00 : f32
    %336 = vector.broadcast %cst_83 : f32 to vector<8x32xf32>
    %337 = arith.mulf %336, %335 : vector<8x32xf32>
    %cst_84 = arith.constant 1.000000e+00 : f32
    %338 = vector.broadcast %cst_84 : f32 to vector<8x32xf32>
    %339 = arith.subf %337, %338 : vector<8x32xf32>
    %340 = vector.extract_strided_slice %332 {offsets = [0, 96], sizes = [8, 32], strides = [1, 1]} : vector<8x128xf32> to vector<8x32xf32>
    %341 = arith.mulf %334, %301 : vector<8x32xf32>
    %342 = arith.mulf %333, %339 : vector<8x32xf32>
    %343 = arith.addf %341, %342 : vector<8x32xf32>
    %344 = math.tanh %343 : vector<8x32xf32>
    %345 = arith.mulf %340, %344 : vector<8x32xf32>
    %346 = tpu.concatenate %51, %93, %135, %177, %219, %261, %303, %345 in 0 : vector<8x32xf32>, vector<8x32xf32>, vector<8x32xf32>, vector<8x32xf32>, vector<8x32xf32>, vector<8x32xf32>, vector<8x32xf32>, vector<8x32xf32> -> vector<64x32xf32>
    %347 = tpu.transpose %346, [1, 0] : vector<64x32xf32> -> vector<32x64xf32>
    %c0_85 = arith.constant 0 : index
    %c0_86 = arith.constant 0 : index
    %348 = vector.load %arg5[%c0_85, %c0_86] : memref<128x32xf32, #tpu.memory_space<vmem>>, vector<128x32xf32>
    %cst_87 = arith.constant dense<0.000000e+00> : vector<128x64xf32>
    %349 = tpu.matmul %348, %347, %cst_87 {dimension_numbers = #tpu.dot_dimension_numbers<[1], [0], [0], [1], [0, 0, 1, 1], [], []>} : vector<128x32xf32>, vector<32x64xf32>, vector<128x64xf32> -> vector<128x64xf32>
    %350 = math.tanh %349 : vector<128x64xf32>
    %c0_88 = arith.constant 0 : index
    %c0_89 = arith.constant 0 : index
    %351 = vector.load %arg6[%c0_88, %c0_89] : memref<1x128xf32, #tpu.memory_space<vmem>>, vector<1x128xf32>
    %cst_90 = arith.constant dense<0.000000e+00> : vector<1x64xf32>
    %352 = tpu.matmul %351, %350, %cst_90 {dimension_numbers = #tpu.dot_dimension_numbers<[1], [0], [0], [1], [0, 0, 1, 1], [], []>} : vector<1x128xf32>, vector<128x64xf32>, vector<1x64xf32> -> vector<1x64xf32>
    %353 = math.tanh %352 : vector<1x64xf32>
    %c0_91 = arith.constant 0 : index
    %c0_92 = arith.constant 0 : index
    %354 = vector.load %arg7[%c0_91, %c0_92] : memref<1x64xf32, #tpu.memory_space<vmem>>, vector<1x64xf32>
    tpu.vector_store %arg7[%c0_91, %c0_92], %353 {strides = array<i32>} : memref<1x64xf32, #tpu.memory_space<vmem>>, vector<1x64xf32>,
    return
  }
}

</mosaic_0001>

<bundles_post_ra>
// kernel: stock_predictor_forward.1
= control target key start
LH: loop header
LB: loop body
LE: loop exit
PB: predicated region body
PF: predicated region fallthrough
CT: control target
= control target key end

     0   :  { %vm60_vm0 = vcmask 1043456   ;;  %vm35_vm1 = vcmask 31744   ;;  %v3609_v3 = vmov 0.0|0.0   ;;  %vm3610_vm2 = vmmov 0   ;;  %s3613_s25 = smov 32   ;;  %s4160_s1 = inlined_call_operand.vmem [shape: f32[4,128], index: 1, kind: input, shape index: {}]   ;;  %s4161_s0 = inlined_call_operand.vmem [shape: f32[64,4], index: 0, kind: input, shape index: {}]   ;;  %s4162_s2 = inlined_call_operand.vmem [shape: f32[32,128], index: 2, kind: input, shape index: {}]   ;;  %s4163_s4 = inlined_call_operand.vmem [shape: f32[32,128], index: 4, kind: input, shape index: {}]   ;;  %s4164_s3 = inlined_call_operand.vmem [shape: f32[32,128], index: 3, kind: input, shape index: {}]   ;;  %s4165_s5 = inlined_call_operand.vmem [shape: f32[128,32], index: 5, kind: input, shape index: {}]   ;;  %s4166_s6 = inlined_call_operand.vmem [shape: f32[1,128], index: 6, kind: input, shape index: {}]   ;;  %s4167_s7 = inlined_call_operand.vmem [shape: f32[1,64], index: 7, kind: output, shape index: {}]  }
   0x1   :  { %v34_v0 = vld [vmem:[%s4160_s1] sm:$0xf]  ;;  %v27_v2 = vld [vmem:[%s4161_s0 + $0x8] sm:$0xff]  ;;  %3272 = vmatprep.subr.bf16.mxu1 %v3609_v3  ;;  %v28_v6 = vld [vmem:[%s4161_s0 + $0x10] sm:$0xff]  ;;  %v3611_v8 = vmov 0.0   ;;  %vm181_vm3 = vcmask 261120  }
   0x2   :  { %v26_v1 = vld [vmem:[%s4161_s0] sm:$0xff]  ;;  %2913 = vmatprep.subr.msk.mxu0 %vm60_vm0, %v34_v0  ;;  %v170_v5 = vld [vmem:[%s4162_s2 + $0x8] sm:$0xff]  ;;  %2946 = vmatprep.mubr.msk.f32.mxu1 %vm3610_vm2, %v3611_v8  ;;  %v171_v9 = vld [vmem:[%s4162_s2 + $0x10] sm:$0xff]  ;;  %vm2650_vm5 = vcmask 516096  }
   0x3   :  { %2915 = vmatprep.mubr.msk.f32.mxu0 %vm35_vm1, %v26_v1  ;;  %v169_v4 = vld [vmem:[%s4162_s2] sm:$0xff]  ;;  %2914 = vmatpush3.msk.msra.mxu0 %vm60_vm0, %v34_v0  ;;  %v172_v10 = vld [vmem:[%s4162_s2 + $0x18] sm:$0xff]  ;;  %v31_v14 = vld [vmem:[%s4161_s0 + $0x28] sm:$0xff] }
   0x4   :  { %v3674_v7 = vpack.c.bf16 %v170_v5, %v169_v4  ;;  %2916 = vmatmul.mubr.msk.f32.vlgmr.msra.gmra.mrb[0].mxu0 %vm35_vm1, %v27_v2  ;;  %3266 = vmatprep.subr.bf16.mxu0 %v3609_v3  ;;  %v29_v11 = vld [vmem:[%s4161_s0 + $0x18] sm:$0xff]  ;;  %v3691_v12 = vpack.c.bf16 %v172_v10, %v171_v9  ;;  %v30_v13 = vld [vmem:[%s4161_s0 + $0x20] sm:$0xff]  ;;  %v32_v15 = vld [vmem:[%s4161_s0 + $0x30] sm:$0xff] }
   0x5   :  { %2918 = vmatprep.mubr.msk.f32.mxu0 %vm35_vm1, %v28_v6  ;;  %v33_v16 = vld [vmem:[%s4161_s0 + $0x38] sm:$0xff]  ;;  %s3612_s0 = smov 64   ;;  %v177_v39 = vld [vmem:[%s4163_s4] sm:$0xff]  ;;  %v178_v40 = vld [vmem:[%s4163_s4 + $0x8] sm:$0xff] }
   0x6   :  { %3268 = vmatpush3.bf16.msra.mxu0 %v3674_v7  ;;  %v179_v41 = vld [vmem:[%s4163_s4 + $0x10] sm:$0xff]  ;;  %v3750_v42 = vpack.c.bf16 %v178_v40, %v177_v39  ;;  %v180_v43 = vld [vmem:[%s4163_s4 + $0x18] sm:$0xff]  ;;  %v173_v45 = vld [vmem:[%s4164_s3] sm:$0xff] }
   0x7   :  { %3269 = vmatprep.subr.bf16.mxu0 %v3609_v3  ;;  %v3756_v44 = vpack.c.bf16 %v180_v43, %v179_v41  ;;  %v174_v46 = vld [vmem:[%s4164_s3 + $0x8] sm:$0xff]  ;;  %v175_v48 = vld [vmem:[%s4164_s3 + $0x10] sm:$0xff]  ;;  %v176_v49 = vld [vmem:[%s4164_s3 + $0x18] sm:$0xff] }
   0x8   :  { %2919 = vmatmul.mubr.msk.f32.gmra.mrb[2].mxu0 %vm35_vm1, %v29_v11  ;;  %3274 = vmatpush3.bf16.msra.mxu1 %v3750_v42  ;;  %v3766_v47 = vpack.c.bf16 %v174_v46, %v173_v45  ;;  %v3778_v51 = vpack.c.bf16 %v176_v49, %v175_v48  ;;  %vm4031_vm4 = vmpackc.low %vm181_vm3, %vm181_vm3 }
   0x9   :  { %2921 = vmatprep.mubr.msk.f32.mxu0 %vm35_vm1, %v30_v13  ;;  %3275 = vmatprep.subr.bf16.mxu1 %v3609_v3 }
   0xa   :  { %3271 = vmatpush3.bf16.msra.mxu0 %v3691_v12 }
   0xb   :  { %3284 = vmatprep.subr.bf16.mxu0 %v3609_v3 }
   0xc   :  { %2922 = vmatmul.mubr.msk.f32.gmra.mrb[4].mxu0 %vm35_vm1, %v31_v14  ;;  %3277 = vmatpush3.bf16.msra.mxu1 %v3756_v44 }
   0xd   :  { %2924 = vmatprep.mubr.msk.f32.mxu0 %vm35_vm1, %v32_v15  ;;  %3278 = vmatprep.subr.bf16.mxu1 %v3609_v3 }
   0xf   :  { %2947 = vmatmul.mubr.f32.vlgmr.msra.gmra.mrb[0].mxu1 %v3611_v8 }
  0x10   :  { %2925 = vmatmul.mubr.msk.f32.gmra.mrb[6].mxu0 %vm35_vm1, %v33_v16  ;;  %3280 = vmatpush3.bf16.msra.mxu1 %v3766_v47 }
  0x11   :  { %2935 = vmatprep.mubr.msk.f32.mxu0 %vm3610_vm2, %v3611_v8  ;;  %2957 = vmatprep.mubr.msk.f32.mxu1 %vm3610_vm2, %v3611_v8 }
  0x12   :  { %3281 = vmatprep.subr.bf16.mxu1 %v3609_v3 }
  0x14   :  { %2936 = vmatmul.mubr.f32.vlgmr.msra.gmra.mrb[8].mxu0 %v3611_v8  ;;  %3283 = vmatpush3.bf16.msra.mxu1 %v3778_v51 }
  0x15   :  { %3286 = vmatpush3.bf16.msra.mxu0 %v3674_v7  ;;  %2968 = vmatprep.mubr.msk.f32.mxu0 %vm3610_vm2, %v3611_v8 }
  0x16   :  { %3287 = vmatprep.subr.bf16.mxu0 %v3609_v3  ;;  %3302 = vmatprep.subr.bf16.mxu1 %v3609_v3 }
  0x19   :  { %3289 = vmatpush3.bf16.msra.mxu0 %v3691_v12 }
  0x1a   :  { %3290 = vmatprep.subr.bf16.mxu0 %v3609_v3 }
  0xd7   :  { %v3722_v17 = vpop.f32.mrb[0].mxu0 }
  0xd8   :  { %v130_v18 = vpop.f32.mrb[1].mxu0 }
  0xdb   :  { %v3724_v19 = vpop.f32.mrb[2].mxu0 }
  0xdc   :  { %v3726_v20 = vpop.f32.mrb[3].mxu0 }
  0xdf   :  { %v3728_v21 = vpop.f32.mrb[4].mxu0 }
  0xe0   :  { %v3730_v22 = vpop.f32.mrb[5].mxu0 }
  0xe3   :  { %v3732_v23 = vpop.f32.mrb[6].mxu0 }
  0xe4   :  { %v3734_v24 = vpop.f32.mrb[7].mxu0 }
  0xe7   :  { %v251_v25 = vpop.f32.mrb[8].mxu0 }
  0xe8   :  { %v255_v26 = vadd.f32 %v251_v25, %v130_v18  ;;  %v2937_v27 = vpop.f32.mrb[9].mxu0 }
  0xea   :  { %v2665_v28 = vmul.f32 -1.442695, %v255_v26 }
  0xec   :  { %3479 = vpow2.f32 %v2665_v28 }
  0xf6   :  { %v3480_v29 = vpop.eup %3479 }
  0xf7   :  { %v259_v30 = vadd.f32 1.0, %v3480_v29 }
  0xf9   :  { %3481 = vrcp.f32 %v259_v30 }
 0x103   :  { %v3482_v31 = vpop.eup %3481 }
 0x104   :  { %v262_v32 = vmul.f32 2.0, %v3482_v31  ;;  %v264_v36 = vmul.f32 0.0, %v3482_v31 }
 0x106   :  { %v2666_v33 = vadd.f32 -1.0, %v262_v32 }
 0x108   :  { %266 = vrot.lane.b32.xlu0 %v2666_v33, %s3612_s0 }
 0x17a   :  { %v267_v34 = vpop.permute.xlu0 %266 }
 0x17b   :  { %v269_v35 = vmul.f32 %v3482_v31, %v267_v34 }
 0x17d   :  { %271 = vrot.lane.b32.xlu0 %v269_v35, %s3613_s25 }
 0x1ef   :  { %v272_v37 = vpop.permute.xlu0 %271 }
 0x1f0   :  { %v3738_v38 = vadd.f32 %v272_v37, %v264_v36 }
 0x1f2   :  { %3483 = vtanh.f32 %v3738_v38 }
 0x1fc   :  { %v3484_v50 = vpop.eup %3483 }
 0x1fd   :  { %277 = vrot.lane.b32.xlu1 %v3484_v50, %s3612_s0 }
 0x26f   :  { %v278_v52 = vpop.permute.xlu1 %277 }
 0x270   :  { %v280_v53 = vmul.f32 %v3482_v31, %v278_v52 }
 0x272   :  { %352 = vrot.lane.b32.xlu1 %v280_v53, %s3613_s25 }
 0x2e4   :  { %v353_v54 = vpop.permute.xlu1 %352 }
 0x2e5   :  { %2958 = vmatmul.mubr.msk.f32.vlgmr.msra.gmra.mrb[0].mxu1 %vm181_vm3, %v353_v54  ;;  %2969 = vmatmul.mubr.msk.f32.vlgmr.msra.gmra.mrb[10].mxu0 %vm181_vm3, %v353_v54 }
 0x2e6   :  { %3292 = vmatpush3.bf16.msra.mxu0 %v3750_v42  ;;  %3304 = vmatpush3.bf16.msra.mxu1 %v3674_v7 }
 0x2e7   :  { %3293 = vmatprep.subr.bf16.mxu0 %v3609_v3  ;;  %3305 = vmatprep.subr.bf16.mxu1 %v3609_v3 }
 0x2e8   :  { %2979 = vmatprep.mubr.msk.f32.mxu0 %vm3610_vm2, %v3611_v8  ;;  %3001 = vmatprep.mubr.msk.f32.mxu1 %vm3610_vm2, %v3611_v8 }
 0x2ea   :  { %3295 = vmatpush3.bf16.msra.mxu0 %v3756_v44  ;;  %3307 = vmatpush3.bf16.msra.mxu1 %v3691_v12 }
 0x2eb   :  { %3296 = vmatprep.subr.bf16.mxu0 %v3609_v3  ;;  %3308 = vmatprep.subr.bf16.mxu1 %v3609_v3 }
 0x3b8   :  { %v422_v55 = vpop.f32.mrb[0].mxu1  ;;  %v517_v56 = vpop.f32.mrb[10].mxu0 }
 0x3b9   :  { %v2668_v57 = vmul.f32 -1.442695, %v422_v55  ;;  %v521_v58 = vadd.f32 %v3722_v17, %v517_v56  ;;  %v2959_v59 = vpop.f32.mrb[1].mxu1  ;;  %v2970_v60 = vpop.f32.mrb[11].mxu0 }
 0x3bb   :  { %3485 = vpow2.f32 %v2668_v57  ;;  %v2671_v61 = vmul.f32 -1.442695, %v521_v58 }
 0x3bd   :  { %3487 = vpow2.f32 %v2671_v61 }
 0x3c5   :  { %v3486_v62 = vpop.eup %3485 }
 0x3c6   :  { %v429_v63 = vadd.f32 1.0, %v3486_v62 }
 0x3c7   :  { %v3488_v0 = vpop.eup %3487 }
 0x3c8   :  { %3489 = vrcp.f32 %v429_v63  ;;  %v525_v1 = vadd.f32 1.0, %v3488_v0 }
 0x3ca   :  { %3491 = vrcp.f32 %v525_v1 }
 0x3d2   :  { %v3490_v2 = vpop.eup %3489 }
 0x3d3   :  { %v432_v4 = vmul.f32 2.0, %v3490_v2  ;;  %v434_v16 = vmul.f32 0.0, %v3490_v2 }
 0x3d4   :  { %v3492_v5 = vpop.eup %3491 }
 0x3d5   :  { %v2669_v6 = vadd.f32 -1.0, %v432_v4  ;;  %v528_v9 = vmul.f32 2.0, %v3492_v5  ;;  %v530_v25 = vmul.f32 %v3492_v5, %v3738_v38 }
 0x3d7   :  { %436 = vrot.lane.b32.xlu0 %v2669_v6, %s3612_s0  ;;  %v2672_v10 = vadd.f32 -1.0, %v528_v9 }
 0x3d9   :  { %532 = vrot.lane.b32.xlu1 %v2672_v10, %s3612_s0 }
 0x449   :  { %v437_v11 = vpop.permute.xlu0 %436 }
 0x44a   :  { %v439_v13 = vmul.f32 %v3490_v2, %v437_v11 }
 0x44b   :  { %v533_v14 = vpop.permute.xlu1 %532 }
 0x44c   :  { %v535_v15 = vmul.f32 %v3492_v5, %v533_v14  ;;  %441 = vrot.lane.b32.xlu0 %v439_v13, %s3613_s25 }
 0x44e   :  { %537 = vrot.lane.b32.xlu1 %v535_v15, %s3613_s25 }
 0x4be   :  { %v442_v17 = vpop.permute.xlu0 %441 }
 0x4bf   :  { %v3805_v18 = vadd.f32 %v442_v17, %v434_v16 }
 0x4c0   :  { %v538_v26 = vpop.permute.xlu1 %537 }
 0x4c1   :  { %3493 = vtanh.f32 %v3805_v18  ;;  %v540_v27 = vadd.f32 %v538_v26, %v530_v25 }
 0x4c3   :  { %3495 = vtanh.f32 %v540_v27 }
 0x4cb   :  { %v3494_v28 = vpop.eup %3493 }
 0x4cc   :  { %447 = vrot.lane.b32.xlu0 %v3494_v28, %s3612_s0 }
 0x4cd   :  { %v3496_v29 = vpop.eup %3495 }
 0x4ce   :  { %543 = vrot.lane.b32.xlu1 %v3496_v29, %s3612_s0 }
 0x53e   :  { %v448_v30 = vpop.permute.xlu0 %447 }
 0x53f   :  { %v450_v31 = vmul.f32 %v3490_v2, %v448_v30 }
 0x540   :  { %v544_v32 = vpop.permute.xlu1 %543 }
 0x541   :  { %v546_v33 = vmul.f32 %v3492_v5, %v544_v32  ;;  %548 = vrot.lane.b32.xlu0 %v450_v31, %s3613_s25 }
 0x543   :  { %623 = vrot.lane.b32.xlu1 %v546_v33, %s3613_s25 }
 0x5b3   :  { %v3813_v34 = vpop.permute.xlu0 %548 }
 0x5b4   :  { %2980 = vmatmul.mubr.msk.f32.vlgmr.msra.gmra.mrb[12].mxu0 %vm181_vm3, %v3813_v34 }
 0x5b5   :  { %3298 = vmatpush3.bf16.msra.mxu0 %v3766_v47  ;;  %v624_v35 = vpop.permute.xlu1 %623  ;;  %2990 = vmatprep.mubr.msk.f32.mxu0 %vm3610_vm2, %v3611_v8 }
 0x5b6   :  { %3002 = vmatmul.mubr.msk.f32.vlgmr.msra.gmra.mrb[2].mxu1 %vm181_vm3, %v624_v35  ;;  %3299 = vmatprep.subr.bf16.mxu0 %v3609_v3 }
 0x5b7   :  { %3310 = vmatpush3.bf16.msra.mxu1 %v3750_v42  ;;  %3012 = vmatprep.mubr.msk.f32.mxu1 %vm3610_vm2, %v3611_v8 }
 0x5b8   :  { %3311 = vmatprep.subr.bf16.mxu1 %v3609_v3 }
 0x5b9   :  { %3301 = vmatpush3.bf16.msra.mxu0 %v3778_v51 }
 0x5ba   :  { %3320 = vmatprep.subr.bf16.mxu0 %v3609_v3 }
 0x5bb   :  { %3313 = vmatpush3.bf16.msra.mxu1 %v3756_v44 }
 0x5bc   :  { %2991 = vmatmul.mubr.msk.f32.vlgmr.msra.gmra.mrb[12].mxu0 %vm181_vm3, %v624_v35  ;;  %3314 = vmatprep.subr.bf16.mxu1 %v3609_v3 }
 0x5bd   :  { %3322 = vmatpush3.bf16.msra.mxu0 %v3674_v7  ;;  %3034 = vmatprep.mubr.msk.f32.mxu0 %vm3610_vm2, %v3611_v8 }
 0x5be   :  { %3323 = vmatprep.subr.bf16.mxu0 %v3609_v3 }
 0x5c1   :  { %3325 = vmatpush3.bf16.msra.mxu0 %v3691_v12 }
 0x5c2   :  { %3326 = vmatprep.subr.bf16.mxu0 %v3609_v3 }
 0x689   :  { %v788_v36 = vpop.f32.mrb[2].mxu1 }
 0x68a   :  { %v792_v37 = vadd.f32 %v788_v36, %v3726_v20  ;;  %v3003_v38 = vpop.f32.mrb[3].mxu1 }
 0x68c   :  { %v2678_v39 = vmul.f32 -1.442695, %v792_v37 }
 0x68e   :  { %3497 = vpow2.f32 %v2678_v39 }
 0x68f   :  { %v693_v40 = vpop.f32.mrb[12].mxu0 }
 0x690   :  { %v2675_v41 = vmul.f32 -1.442695, %v693_v40  ;;  %v2992_v43 = vpop.f32.mrb[13].mxu0 }
 0x692   :  { %3499 = vpow2.f32 %v2675_v41 }
 0x698   :  { %v3498_v45 = vpop.eup %3497 }
 0x699   :  { %v796_v46 = vadd.f32 1.0, %v3498_v45 }
 0x69b   :  { %3501 = vrcp.f32 %v796_v46 }
 0x69c   :  { %v3500_v48 = vpop.eup %3499 }
 0x69d   :  { %v700_v49 = vadd.f32 1.0, %v3500_v48 }
 0x69f   :  { %3503 = vrcp.f32 %v700_v49 }
 0x6a5   :  { %v3502_v50 = vpop.eup %3501 }
 0x6a6   :  { %v799_v52 = vmul.f32 2.0, %v3502_v50  ;;  %v801_v60 = vmul.f32 %v3502_v50, %v540_v27 }
 0x6a8   :  { %v2679_v53 = vadd.f32 -1.0, %v799_v52 }
 0x6a9   :  { %v3504_v54 = vpop.eup %3503 }
 0x6aa   :  { %803 = vrot.lane.b32.xlu1 %v2679_v53, %s3612_s0  ;;  %v703_v20 = vmul.f32 2.0, %v3504_v54  ;;  %v705_v63 = vmul.f32 %v3504_v54, %v3805_v18 }
 0x6ac   :  { %v2676_v55 = vadd.f32 -1.0, %v703_v20 }
 0x6ae   :  { %707 = vrot.lane.b32.xlu0 %v2676_v55, %s3612_s0 }
 0x71c   :  { %v804_v56 = vpop.permute.xlu1 %803 }
 0x71d   :  { %v806_v57 = vmul.f32 %v3502_v50, %v804_v56 }
 0x71f   :  { %808 = vrot.lane.b32.xlu1 %v806_v57, %s3613_s25 }
 0x720   :  { %v708_v58 = vpop.permute.xlu0 %707 }
 0x721   :  { %v710_v59 = vmul.f32 %v3504_v54, %v708_v58 }
 0x723   :  { %712 = vrot.lane.b32.xlu0 %v710_v59, %s3613_s25 }
 0x791   :  { %v809_v61 = vpop.permute.xlu1 %808 }
 0x792   :  { %v3842_v62 = vadd.f32 %v809_v61, %v801_v60 }
 0x794   :  { %3505 = vtanh.f32 %v3842_v62 }
 0x795   :  { %v713_v0 = vpop.permute.xlu0 %712 }
 0x796   :  { %v3846_v1 = vadd.f32 %v713_v0, %v705_v63 }
 0x798   :  { %3507 = vtanh.f32 %v3846_v1 }
 0x79e   :  { %v3506_v2 = vpop.eup %3505 }
 0x79f   :  { %814 = vrot.lane.b32.xlu1 %v3506_v2, %s3612_s0 }
 0x7a2   :  { %v3508_v4 = vpop.eup %3507 }
 0x7a3   :  { %718 = vrot.lane.b32.xlu0 %v3508_v4, %s3612_s0 }
 0x811   :  { %v815_v5 = vpop.permute.xlu1 %814 }
 0x812   :  { %v817_v6 = vmul.f32 %v3502_v50, %v815_v5 }
 0x814   :  { %894 = vrot.lane.b32.xlu1 %v817_v6, %s3613_s25 }
 0x815   :  { %v719_v9 = vpop.permute.xlu0 %718 }
 0x816   :  { %v721_v10 = vmul.f32 %v3504_v54, %v719_v9 }
 0x818   :  { %819 = vrot.lane.b32.xlu0 %v721_v10, %s3613_s25 }
 0x886   :  { %v895_v11 = vpop.permute.xlu1 %894 }
 0x887   :  { %3035 = vmatmul.mubr.msk.f32.vlgmr.msra.gmra.mrb[14].mxu0 %vm181_vm3, %v895_v11 }
 0x888   :  { %3328 = vmatpush3.bf16.msra.mxu0 %v3750_v42  ;;  %3045 = vmatprep.mubr.msk.f32.mxu0 %vm3610_vm2, %v3611_v8 }
 0x889   :  { %3329 = vmatprep.subr.bf16.mxu0 %v3609_v3 }
 0x88a   :  { %v3858_v13 = vpop.permute.xlu0 %819 }
 0x88b   :  { %3013 = vmatmul.mubr.msk.f32.vlgmr.msra.gmra.mrb[4].mxu1 %vm181_vm3, %v3858_v13 }
 0x88c   :  { %3316 = vmatpush3.bf16.msra.mxu1 %v3766_v47  ;;  %3023 = vmatprep.mubr.msk.f32.mxu1 %vm3610_vm2, %v3611_v8 }
 0x88d   :  { %3317 = vmatprep.subr.bf16.mxu1 %v3609_v3  ;;  %3331 = vmatpush3.bf16.msra.mxu0 %v3756_v44 }
 0x88e   :  { %3332 = vmatprep.subr.bf16.mxu0 %v3609_v3 }
 0x890   :  { %3319 = vmatpush3.bf16.msra.mxu1 %v3778_v51 }
 0x891   :  { %3338 = vmatprep.subr.bf16.mxu1 %v3609_v3 }
 0x893   :  { %3024 = vmatmul.mubr.msk.f32.vlgmr.msra.gmra.mrb[4].mxu1 %vm181_vm3, %v895_v11 }
 0x894   :  { %3340 = vmatpush3.bf16.msra.mxu1 %v3674_v7  ;;  %3067 = vmatprep.mubr.msk.f32.mxu1 %vm3610_vm2, %v3611_v8 }
 0x895   :  { %3341 = vmatprep.subr.bf16.mxu1 %v3609_v3 }
 0x898   :  { %3343 = vmatpush3.bf16.msra.mxu1 %v3691_v12 }
 0x899   :  { %3344 = vmatprep.subr.bf16.mxu1 %v3609_v3 }
 0x95a   :  { %v1059_v14 = vpop.f32.mrb[14].mxu0 }
 0x95b   :  { %v1063_v15 = vadd.f32 %v3724_v19, %v1059_v14  ;;  %v3036_v16 = vpop.f32.mrb[15].mxu0 }
 0x95d   :  { %v2685_v17 = vmul.f32 -1.442695, %v1063_v15 }
 0x95f   :  { %3509 = vpow2.f32 %v2685_v17 }
 0x966   :  { %v964_v18 = vpop.f32.mrb[4].mxu1 }
 0x967   :  { %v2682_v25 = vmul.f32 -1.442695, %v964_v18  ;;  %v3025_v26 = vpop.f32.mrb[5].mxu1 }
 0x969   :  { %v3510_v27 = vpop.eup %3509  ;;  %3511 = vpow2.f32 %v2682_v25 }
 0x96a   :  { %v1067_v28 = vadd.f32 1.0, %v3510_v27 }
 0x96c   :  { %3513 = vrcp.f32 %v1067_v28 }
 0x973   :  { %v3512_v29 = vpop.eup %3511 }
 0x974   :  { %v971_v30 = vadd.f32 1.0, %v3512_v29 }
 0x976   :  { %v3514_v31 = vpop.eup %3513  ;;  %3515 = vrcp.f32 %v971_v30 }
 0x977   :  { %v1070_v32 = vmul.f32 2.0, %v3514_v31  ;;  %v1072_v41 = vmul.f32 %v3514_v31, %v3842_v62 }
 0x979   :  { %v2686_v33 = vadd.f32 -1.0, %v1070_v32 }
 0x97b   :  { %1074 = vrot.lane.b32.xlu1 %v2686_v33, %s3612_s0 }
 0x980   :  { %v3516_v35 = vpop.eup %3515 }
 0x981   :  { %v974_v19 = vmul.f32 2.0, %v3516_v35  ;;  %v976_v46 = vmul.f32 %v3516_v35, %v3846_v1 }
 0x983   :  { %v2683_v36 = vadd.f32 -1.0, %v974_v19 }
 0x985   :  { %978 = vrot.lane.b32.xlu0 %v2683_v36, %s3612_s0 }
 0x9ed   :  { %v1075_v37 = vpop.permute.xlu1 %1074 }
 0x9ee   :  { %v1077_v38 = vmul.f32 %v3514_v31, %v1075_v37 }
 0x9f0   :  { %1079 = vrot.lane.b32.xlu1 %v1077_v38, %s3613_s25 }
 0x9f7   :  { %v979_v39 = vpop.permute.xlu0 %978 }
 0x9f8   :  { %v981_v40 = vmul.f32 %v3516_v35, %v979_v39 }
 0x9fa   :  { %983 = vrot.lane.b32.xlu0 %v981_v40, %s3613_s25 }
 0xa62   :  { %v1080_v43 = vpop.permute.xlu1 %1079 }
 0xa63   :  { %v3883_v45 = vadd.f32 %v1080_v43, %v1072_v41 }
 0xa65   :  { %3517 = vtanh.f32 %v3883_v45 }
 0xa6c   :  { %v984_v48 = vpop.permute.xlu0 %983 }
 0xa6d   :  { %v3887_v49 = vadd.f32 %v984_v48, %v976_v46 }
 0xa6f   :  { %v3518_v50 = vpop.eup %3517  ;;  %3519 = vtanh.f32 %v3887_v49 }
 0xa70   :  { %1085 = vrot.lane.b32.xlu1 %v3518_v50, %s3612_s0 }
 0xa79   :  { %v3520_v52 = vpop.eup %3519 }
 0xa7a   :  { %989 = vrot.lane.b32.xlu0 %v3520_v52, %s3612_s0 }
 0xae2   :  { %v1086_v53 = vpop.permute.xlu1 %1085 }
 0xae3   :  { %v1088_v54 = vmul.f32 %v3514_v31, %v1086_v53 }
 0xae5   :  { %1165 = vrot.lane.b32.xlu1 %v1088_v54, %s3613_s25 }
 0xaec   :  { %v990_v20 = vpop.permute.xlu0 %989 }
 0xaed   :  { %v992_v55 = vmul.f32 %v3516_v35, %v990_v20 }
 0xaef   :  { %1090 = vrot.lane.b32.xlu0 %v992_v55, %s3613_s25 }
 0xb57   :  { %v1166_v56 = vpop.permute.xlu1 %1165 }
 0xb58   :  { %3068 = vmatmul.mubr.msk.f32.vlgmr.msra.gmra.mrb[6].mxu1 %vm181_vm3, %v1166_v56 }
 0xb59   :  { %3346 = vmatpush3.bf16.msra.mxu1 %v3750_v42  ;;  %3078 = vmatprep.mubr.msk.f32.mxu1 %vm3610_vm2, %v3611_v8 }
 0xb5a   :  { %3347 = vmatprep.subr.bf16.mxu1 %v3609_v3 }
 0xb5d   :  { %3349 = vmatpush3.bf16.msra.mxu1 %v3756_v44 }
 0xb5e   :  { %3350 = vmatprep.subr.bf16.mxu1 %v3609_v3 }
 0xb61   :  { %v3901_v57 = vpop.permute.xlu0 %1090 }
 0xb62   :  { %3046 = vmatmul.mubr.msk.f32.vlgmr.msra.gmra.mrb[16].mxu0 %vm181_vm3, %v3901_v57 }
 0xb63   :  { %3334 = vmatpush3.bf16.msra.mxu0 %v3766_v47  ;;  %3056 = vmatprep.mubr.msk.f32.mxu0 %vm3610_vm2, %v3611_v8 }
 0xb64   :  { %3335 = vmatprep.subr.bf16.mxu0 %v3609_v3 }
 0xb67   :  { %3337 = vmatpush3.bf16.msra.mxu0 %v3778_v51 }
 0xb68   :  { %3356 = vmatprep.subr.bf16.mxu0 %v3609_v3 }
 0xb6a   :  { %3057 = vmatmul.mubr.msk.f32.vlgmr.msra.gmra.mrb[16].mxu0 %vm181_vm3, %v1166_v56 }
 0xb6b   :  { %3358 = vmatpush3.bf16.msra.mxu0 %v3674_v7  ;;  %3100 = vmatprep.mubr.msk.f32.mxu0 %vm3610_vm2, %v3611_v8 }
 0xb6c   :  { %3359 = vmatprep.subr.bf16.mxu0 %v3609_v3 }
 0xb6f   :  { %3361 = vmatpush3.bf16.msra.mxu0 %v3691_v12 }
 0xb70   :  { %3362 = vmatprep.subr.bf16.mxu0 %v3609_v3 }
 0xc2b   :  { %v1330_v58 = vpop.f32.mrb[6].mxu1 }
 0xc2c   :  { %v1334_v59 = vadd.f32 %v1330_v58, %v3730_v22  ;;  %v3069_v60 = vpop.f32.mrb[7].mxu1 }
 0xc2e   :  { %v2692_v61 = vmul.f32 -1.442695, %v1334_v59 }
 0xc30   :  { %3521 = vpow2.f32 %v2692_v61 }
 0xc3a   :  { %v3522_v62 = vpop.eup %3521 }
 0xc3b   :  { %v1338_v63 = vadd.f32 1.0, %v3522_v62 }
 0xc3d   :  { %3523 = vrcp.f32 %v1338_v63  ;;  %v1235_v0 = vpop.f32.mrb[16].mxu0 }
 0xc3e   :  { %v2689_v1 = vmul.f32 -1.442695, %v1235_v0  ;;  %v3058_v2 = vpop.f32.mrb[17].mxu0 }
 0xc40   :  { %3525 = vpow2.f32 %v2689_v1 }
 0xc47   :  { %v3524_v4 = vpop.eup %3523 }
 0xc48   :  { %v1341_v5 = vmul.f32 2.0, %v3524_v4  ;;  %v1343_v25 = vmul.f32 %v3524_v4, %v3883_v45 }
 0xc4a   :  { %v3526_v6 = vpop.eup %3525  ;;  %v2693_v9 = vadd.f32 -1.0, %v1341_v5 }
 0xc4b   :  { %v1242_v10 = vadd.f32 1.0, %v3526_v6 }
 0xc4c   :  { %1345 = vrot.lane.b32.xlu1 %v2693_v9, %s3612_s0 }
 0xc4d   :  { %3527 = vrcp.f32 %v1242_v10 }
 0xc57   :  { %v3528_v11 = vpop.eup %3527 }
 0xc58   :  { %v1245_v22 = vmul.f32 2.0, %v3528_v11  ;;  %v1247_v29 = vmul.f32 %v3528_v11, %v3887_v49 }
 0xc5a   :  { %v2690_v14 = vadd.f32 -1.0, %v1245_v22 }
 0xc5c   :  { %1249 = vrot.lane.b32.xlu0 %v2690_v14, %s3612_s0 }
 0xcbe   :  { %v1346_v15 = vpop.permute.xlu1 %1345 }
 0xcbf   :  { %v1348_v16 = vmul.f32 %v3524_v4, %v1346_v15 }
 0xcc1   :  { %1350 = vrot.lane.b32.xlu1 %v1348_v16, %s3613_s25 }
 0xcce   :  { %v1250_v17 = vpop.permute.xlu0 %1249 }
 0xccf   :  { %v1252_v18 = vmul.f32 %v3528_v11, %v1250_v17 }
 0xcd1   :  { %1254 = vrot.lane.b32.xlu0 %v1252_v18, %s3613_s25 }
 0xd33   :  { %v1351_v26 = vpop.permute.xlu1 %1350 }
 0xd34   :  { %v3924_v27 = vadd.f32 %v1351_v26, %v1343_v25 }
 0xd36   :  { %3529 = vtanh.f32 %v3924_v27 }
 0xd40   :  { %v3530_v28 = vpop.eup %3529 }
 0xd41   :  { %1356 = vrot.lane.b32.xlu1 %v3530_v28, %s3612_s0 }
 0xd43   :  { %v1255_v30 = vpop.permute.xlu0 %1254 }
 0xd44   :  { %v3929_v31 = vadd.f32 %v1255_v30, %v1247_v29 }
 0xd46   :  { %3531 = vtanh.f32 %v3929_v31 }
 0xd50   :  { %v3532_v32 = vpop.eup %3531 }
 0xd51   :  { %1260 = vrot.lane.b32.xlu0 %v3532_v32, %s3612_s0 }
 0xdb3   :  { %v1357_v33 = vpop.permute.xlu1 %1356 }
 0xdb4   :  { %v1359_v35 = vmul.f32 %v3524_v4, %v1357_v33 }
 0xdb6   :  { %1436 = vrot.lane.b32.xlu1 %v1359_v35, %s3613_s25 }
 0xdc3   :  { %v1261_v19 = vpop.permute.xlu0 %1260 }
 0xdc4   :  { %v1263_v36 = vmul.f32 %v3528_v11, %v1261_v19 }
 0xdc6   :  { %1361 = vrot.lane.b32.xlu0 %v1263_v36, %s3613_s25 }
 0xe28   :  { %v1437_v37 = vpop.permute.xlu1 %1436 }
 0xe29   :  { %3101 = vmatmul.mubr.msk.f32.vlgmr.msra.gmra.mrb[18].mxu0 %vm181_vm3, %v1437_v37 }
 0xe2a   :  { %3364 = vmatpush3.bf16.msra.mxu0 %v3750_v42  ;;  %3111 = vmatprep.mubr.msk.f32.mxu0 %vm3610_vm2, %v3611_v8 }
 0xe2b   :  { %3365 = vmatprep.subr.bf16.mxu0 %v3609_v3 }
 0xe2e   :  { %3367 = vmatpush3.bf16.msra.mxu0 %v3756_v44 }
 0xe2f   :  { %3368 = vmatprep.subr.bf16.mxu0 %v3609_v3 }
 0xe38   :  { %v3942_v38 = vpop.permute.xlu0 %1361 }
 0xe39   :  { %3079 = vmatmul.mubr.msk.f32.vlgmr.msra.gmra.mrb[8].mxu1 %vm181_vm3, %v3942_v38 }
 0xe3a   :  { %3352 = vmatpush3.bf16.msra.mxu1 %v3766_v47  ;;  %3089 = vmatprep.mubr.msk.f32.mxu1 %vm3610_vm2, %v3611_v8 }
 0xe3b   :  { %3353 = vmatprep.subr.bf16.mxu1 %v3609_v3 }
 0xe3e   :  { %3355 = vmatpush3.bf16.msra.mxu1 %v3778_v51 }
 0xe3f   :  { %3374 = vmatprep.subr.bf16.mxu1 %v3609_v3 }
 0xe41   :  { %3090 = vmatmul.mubr.msk.f32.vlgmr.msra.gmra.mrb[8].mxu1 %vm181_vm3, %v1437_v37 }
 0xe42   :  { %3376 = vmatpush3.bf16.msra.mxu1 %v3674_v7  ;;  %3133 = vmatprep.mubr.msk.f32.mxu1 %vm3610_vm2, %v3611_v8 }
 0xe43   :  { %3377 = vmatprep.subr.bf16.mxu1 %v3609_v3 }
 0xe46   :  { %3379 = vmatpush3.bf16.msra.mxu1 %v3691_v12 }
 0xe47   :  { %3380 = vmatprep.subr.bf16.mxu1 %v3609_v3 }
 0xefc   :  { %v1601_v39 = vpop.f32.mrb[18].mxu0 }
 0xefd   :  { %v1605_v40 = vadd.f32 %v3728_v21, %v1601_v39  ;;  %v3102_v41 = vpop.f32.mrb[19].mxu0 }
 0xeff   :  { %v2699_v43 = vmul.f32 -1.442695, %v1605_v40 }
 0xf01   :  { %3533 = vpow2.f32 %v2699_v43 }
 0xf0b   :  { %v3534_v45 = vpop.eup %3533 }
 0xf0c   :  { %v1609_v46 = vadd.f32 1.0, %v3534_v45 }
 0xf0e   :  { %3535 = vrcp.f32 %v1609_v46 }
 0xf14   :  { %v1506_v48 = vpop.f32.mrb[8].mxu1 }
 0xf15   :  { %v2696_v49 = vmul.f32 -1.442695, %v1506_v48  ;;  %v3091_v50 = vpop.f32.mrb[9].mxu1 }
 0xf17   :  { %3537 = vpow2.f32 %v2696_v49 }
 0xf18   :  { %v3536_v52 = vpop.eup %3535 }
 0xf19   :  { %v1612_v53 = vmul.f32 2.0, %v3536_v52  ;;  %v1614_v63 = vmul.f32 %v3536_v52, %v3924_v27 }
 0xf1b   :  { %v2700_v54 = vadd.f32 -1.0, %v1612_v53 }
 0xf1d   :  { %1616 = vrot.lane.b32.xlu1 %v2700_v54, %s3612_s0 }
 0xf21   :  { %v3538_v20 = vpop.eup %3537 }
 0xf22   :  { %v1513_v55 = vadd.f32 1.0, %v3538_v20 }
 0xf24   :  { %3539 = vrcp.f32 %v1513_v55 }
 0xf2e   :  { %v3540_v56 = vpop.eup %3539 }
 0xf2f   :  { %v1516_v21 = vmul.f32 2.0, %v3540_v56  ;;  %v1518_v4 = vmul.f32 %v3540_v56, %v3929_v31 }
 0xf31   :  { %v2697_v58 = vadd.f32 -1.0, %v1516_v21 }
 0xf33   :  { %1520 = vrot.lane.b32.xlu0 %v2697_v58, %s3612_s0 }
 0xf8f   :  { %v1617_v59 = vpop.permute.xlu1 %1616 }
 0xf90   :  { %v1619_v60 = vmul.f32 %v3536_v52, %v1617_v59  ;;  %v3416_v59 = vpack.c.bf16 %v3942_v38, %v3901_v57 }
 0xf92   :  { %1621 = vrot.lane.b32.xlu1 %v1619_v60, %s3613_s25 }
 0xfa5   :  { %v1521_v61 = vpop.permute.xlu0 %1520 }
 0xfa6   :  { %v1523_v62 = vmul.f32 %v3540_v56, %v1521_v61 }
 0xfa8   :  { %1525 = vrot.lane.b32.xlu0 %v1523_v62, %s3613_s25 }
0x1004   :  { %v1622_v0 = vpop.permute.xlu1 %1621 }
0x1005   :  { %v3965_v1 = vadd.f32 %v1622_v0, %v1614_v63 }
0x1007   :  { %3541 = vtanh.f32 %v3965_v1 }
0x1011   :  { %v3542_v2 = vpop.eup %3541 }
0x1012   :  { %1627 = vrot.lane.b32.xlu1 %v3542_v2, %s3612_s0 }
0x101a   :  { %v1526_v5 = vpop.permute.xlu0 %1525 }
0x101b   :  { %v3970_v6 = vadd.f32 %v1526_v5, %v1518_v4 }
0x101d   :  { %3543 = vtanh.f32 %v3970_v6 }
0x1027   :  { %v3544_v9 = vpop.eup %3543 }
0x1028   :  { %1531 = vrot.lane.b32.xlu0 %v3544_v9, %s3612_s0 }
0x1084   :  { %v1628_v10 = vpop.permute.xlu1 %1627 }
0x1085   :  { %v1630_v11 = vmul.f32 %v3536_v52, %v1628_v10 }
0x1087   :  { %1707 = vrot.lane.b32.xlu1 %v1630_v11, %s3613_s25 }
0x109a   :  { %v1532_v22 = vpop.permute.xlu0 %1531 }
0x109b   :  { %v1534_v14 = vmul.f32 %v3540_v56, %v1532_v22 }
0x109d   :  { %1632 = vrot.lane.b32.xlu0 %v1534_v14, %s3613_s25 }
0x10f9   :  { %v1708_v15 = vpop.permute.xlu1 %1707 }
0x10fa   :  { %3134 = vmatmul.mubr.msk.f32.vlgmr.msra.gmra.mrb[10].mxu1 %vm181_vm3, %v1708_v15 }
0x10fb   :  { %3382 = vmatpush3.bf16.msra.mxu1 %v3750_v42  ;;  %3144 = vmatprep.mubr.msk.f32.mxu1 %vm3610_vm2, %v3611_v8 }
0x10fc   :  { %3383 = vmatprep.subr.bf16.mxu1 %v3609_v3 }
0x10ff   :  { %3385 = vmatpush3.bf16.msra.mxu1 %v3756_v44 }
0x1100   :  { %3386 = vmatprep.subr.bf16.mxu1 %v3609_v3 }
0x110f   :  { %v3983_v16 = vpop.permute.xlu0 %1632 }
0x1110   :  { %3112 = vmatmul.mubr.msk.f32.vlgmr.msra.gmra.mrb[20].mxu0 %vm181_vm3, %v3983_v16 }
0x1111   :  { %3370 = vmatpush3.bf16.msra.mxu0 %v3766_v47  ;;  %3122 = vmatprep.mubr.msk.f32.mxu0 %vm3610_vm2, %v3611_v8 }
0x1112   :  { %3371 = vmatprep.subr.bf16.mxu0 %v3609_v3 }
0x1115   :  { %3373 = vmatpush3.bf16.msra.mxu0 %v3778_v51 }
0x1116   :  { %3392 = vmatprep.subr.bf16.mxu0 %v3609_v3 }
0x1118   :  { %3123 = vmatmul.mubr.msk.f32.vlgmr.msra.gmra.mrb[20].mxu0 %vm181_vm3, %v1708_v15 }
0x1119   :  { %3394 = vmatpush3.bf16.msra.mxu0 %v3674_v7  ;;  %3166 = vmatprep.mubr.msk.f32.mxu0 %vm3610_vm2, %v3611_v8 }
0x111a   :  { %3395 = vmatprep.subr.bf16.mxu0 %v3609_v3 }
0x111d   :  { %3397 = vmatpush3.bf16.msra.mxu0 %v3691_v12 }
0x111e   :  { %3398 = vmatprep.subr.bf16.mxu0 %v3609_v3 }
0x11cd   :  { %v1872_v17 = vpop.f32.mrb[10].mxu1 }
0x11ce   :  { %v1876_v18 = vadd.f32 %v1872_v17, %v3734_v24  ;;  %v3135_v25 = vpop.f32.mrb[11].mxu1 }
0x11d0   :  { %v2706_v26 = vmul.f32 -1.442695, %v1876_v18 }
0x11d2   :  { %3545 = vpow2.f32 %v2706_v26 }
0x11dc   :  { %v3546_v27 = vpop.eup %3545 }
0x11dd   :  { %v1880_v28 = vadd.f32 1.0, %v3546_v27 }
0x11df   :  { %3547 = vrcp.f32 %v1880_v28 }
0x11e9   :  { %v3548_v29 = vpop.eup %3547 }
0x11ea   :  { %v1883_v7 = vmul.f32 2.0, %v3548_v29  ;;  %v1885_v43 = vmul.f32 %v3548_v29, %v3965_v1 }
0x11eb   :  { %v1777_v30 = vpop.f32.mrb[20].mxu0 }
0x11ec   :  { %v2703_v31 = vmul.f32 -1.442695, %v1777_v30  ;;  %v3124_v32 = vpop.f32.mrb[21].mxu0  ;;  %v2707_v33 = vadd.f32 -1.0, %v1883_v7 }
0x11ee   :  { %3549 = vpow2.f32 %v2703_v31  ;;  %1887 = vrot.lane.b32.xlu1 %v2707_v33, %s3612_s0 }
0x11f8   :  { %v3550_v12 = vpop.eup %3549 }
0x11f9   :  { %v1784_v35 = vadd.f32 1.0, %v3550_v12 }
0x11fb   :  { %3551 = vrcp.f32 %v1784_v35 }
0x1205   :  { %v3552_v19 = vpop.eup %3551 }
0x1206   :  { %v1787_v24 = vmul.f32 2.0, %v3552_v19  ;;  %v1789_v49 = vmul.f32 %v3552_v19, %v3970_v6 }
0x1208   :  { %v2704_v36 = vadd.f32 -1.0, %v1787_v24 }
0x120a   :  { %1791 = vrot.lane.b32.xlu0 %v2704_v36, %s3612_s0 }
0x1260   :  { %v1888_v37 = vpop.permute.xlu1 %1887 }
0x1261   :  { %v1890_v39 = vmul.f32 %v3548_v29, %v1888_v37 }
0x1263   :  { %1892 = vrot.lane.b32.xlu1 %v1890_v39, %s3613_s25 }
0x127c   :  { %v1792_v40 = vpop.permute.xlu0 %1791 }
0x127d   :  { %v1794_v41 = vmul.f32 %v3552_v19, %v1792_v40 }
0x127f   :  { %1796 = vrot.lane.b32.xlu0 %v1794_v41, %s3613_s25 }
0x12d5   :  { %v1893_v45 = vpop.permute.xlu1 %1892 }
0x12d6   :  { %v4006_v46 = vadd.f32 %v1893_v45, %v1885_v43 }
0x12d8   :  { %3553 = vtanh.f32 %v4006_v46 }
0x12e2   :  { %v3554_v48 = vpop.eup %3553 }
0x12e3   :  { %1898 = vrot.lane.b32.xlu1 %v3554_v48, %s3612_s0 }
0x12f1   :  { %v1797_v50 = vpop.permute.xlu0 %1796 }
0x12f2   :  { %v4011_v52 = vadd.f32 %v1797_v50, %v1789_v49  ;;  %v2348_v49 = vld [vmem:[%s4165_s5] sm:$0xff] }
0x12f4   :  { %3555 = vtanh.f32 %v4011_v52 }
0x12fe   :  { %v3556_v53 = vpop.eup %3555 }
0x12ff   :  { %1802 = vrot.lane.b32.xlu0 %v3556_v53, %s3612_s0 }
0x1355   :  { %v1899_v54 = vpop.permute.xlu1 %1898 }
0x1356   :  { %v1901_v20 = vmul.f32 %v3548_v29, %v1899_v54 }
0x1358   :  { %1978 = vrot.lane.b32.xlu1 %v1901_v20, %s3613_s25  ;;  %v2349_v20 = vld [vmem:[%s4165_s5 + $0x8] sm:$0xff] }
0x1371   :  { %v1803_v55 = vpop.permute.xlu0 %1802 }
0x1372   :  { %v1805_v56 = vmul.f32 %v3552_v19, %v1803_v55  ;;  %v2350_v55 = vld [vmem:[%s4165_s5 + $0x10] sm:$0xff] }
0x1374   :  { %1903 = vrot.lane.b32.xlu0 %v1805_v56, %s3613_s25  ;;  %v2351_v56 = vld [vmem:[%s4165_s5 + $0x18] sm:$0xff] }
0x13ca   :  { %v1979_v21 = vpop.permute.xlu1 %1978 }
0x13cb   :  { %3167 = vmatmul.mubr.msk.f32.vlgmr.msra.gmra.mrb[22].mxu0 %vm181_vm3, %v1979_v21 }
0x13cc   :  { %3400 = vmatpush3.bf16.msra.mxu0 %v3750_v42  ;;  %3177 = vmatprep.mubr.msk.f32.mxu0 %vm3610_vm2, %v3611_v8  ;;  %v2354_v42 = vld [vmem:[%s4165_s5 + $0x30] sm:$0xff] }
0x13cd   :  { %3401 = vmatprep.subr.bf16.mxu0 %v3609_v3 }
0x13d0   :  { %3403 = vmatpush3.bf16.msra.mxu0 %v3756_v44  ;;  %v3410_v44 = vpack.c.bf16 %v3858_v13, %v3813_v34 }
0x13d1   :  { %3404 = vmatprep.subr.bf16.mxu0 %v3609_v3 }
0x13e6   :  { %v1904_v58 = vpop.permute.xlu0 %1903 }
0x13e7   :  { %3145 = vmatmul.mubr.msk.f32.vlgmr.msra.gmra.mrb[12].mxu1 %vm181_vm3, %v1904_v58  ;;  %v3422_v60 = vpack.c.bf16 %v1904_v58, %v3983_v16  ;;  %v2353_v58 = vld [vmem:[%s4165_s5 + $0x28] sm:$0xff] }
0x13e8   :  { %3388 = vmatpush3.bf16.msra.mxu1 %v3766_v47  ;;  %3155 = vmatprep.mubr.msk.f32.mxu1 %vm3610_vm2, %v3611_v8 }
0x13e9   :  { %3389 = vmatprep.subr.bf16.mxu1 %v3609_v3 }
0x13ec   :  { %3391 = vmatpush3.bf16.msra.mxu1 %v3778_v51 }
0x13ed   :  { %3412 = vmatprep.subr.msk.bf16.mxu1 %vm4031_vm4, %v3410_v44 }
0x13ef   :  { %3156 = vmatmul.mubr.msk.f32.vlgmr.msra.gmra.mrb[12].mxu1 %vm181_vm3, %v1979_v21  ;;  %v2352_v21 = vld [vmem:[%s4165_s5 + $0x20] sm:$0xff] }
0x13f0   :  { %3207 = vmatprep.mubr.msk.f32.mxu1 %vm181_vm3, %v2348_v49 }
0x13f5   :  { %3415 = vmatpush3.bf16.xpose.msk.msra.mxu1 %vm4031_vm4, %v3410_v44  ;;  %v2355_v44 = vld [vmem:[%s4165_s5 + $0x38] sm:$0xff] }
0x13f6   :  { %3418 = vmatprep.subr.msk.bf16.mxu1 %vm4031_vm4, %v3416_v59 }
0x13fd   :  { %3421 = vmatpush3.bf16.xpose.msk.msra.mxu1 %vm4031_vm4, %v3416_v59  ;;  %v2356_v59 = vld [vmem:[%s4165_s5 + $0x40] sm:$0xff] }
0x13fe   :  { %3424 = vmatprep.subr.msk.bf16.mxu1 %vm4031_vm4, %v3422_v60 }
0x1405   :  { %3427 = vmatpush3.bf16.xpose.msk.msra.mxu1 %vm4031_vm4, %v3422_v60  ;;  %v2357_v60 = vld [vmem:[%s4165_s5 + $0x48] sm:$0xff] }
0x149e   :  { %v2143_v34 = vpop.f32.mrb[22].mxu0 }
0x149f   :  { %v2147_v13 = vadd.f32 %v3732_v23, %v2143_v34  ;;  %v3168_v57 = vpop.f32.mrb[23].mxu0  ;;  %v2358_v34 = vld [vmem:[%s4165_s5 + $0x50] sm:$0xff] }
0x14a0   :  { %v2360_v57 = vld [vmem:[%s4165_s5 + $0x60] sm:$0xff] }
0x14a1   :  { %v2713_v38 = vmul.f32 -1.442695, %v2147_v13  ;;  %v2359_v13 = vld [vmem:[%s4165_s5 + $0x58] sm:$0xff] }
0x14a3   :  { %3557 = vpow2.f32 %v2713_v38  ;;  %v2361_v38 = vld [vmem:[%s4165_s5 + $0x68] sm:$0xff] }
0x14ad   :  { %v3558_v61 = vpop.eup %3557 }
0x14ae   :  { %v2151_v62 = vadd.f32 1.0, %v3558_v61  ;;  %v2362_v61 = vld [vmem:[%s4165_s5 + $0x70] sm:$0xff] }
0x14b0   :  { %3559 = vrcp.f32 %v2151_v62  ;;  %v2363_v62 = vld [vmem:[%s4165_s5 + $0x78] sm:$0xff] }
0x14ba   :  { %v3560_v63 = vpop.eup %3559 }
0x14bb   :  { %v2154_v0 = vmul.f32 2.0, %v3560_v63  ;;  %v2156_v17 = vmul.f32 %v3560_v63, %v4006_v46 }
0x14bd   :  { %v2714_v1 = vadd.f32 -1.0, %v2154_v0 }
0x14bf   :  { %2158 = vrot.lane.b32.xlu1 %v2714_v1, %s3612_s0 }
0x14c2   :  { %v2048_v2 = vpop.f32.mrb[12].mxu1 }
0x14c3   :  { %v2710_v4 = vmul.f32 -1.442695, %v2048_v2  ;;  %v3157_v5 = vpop.f32.mrb[13].mxu1 }
0x14c5   :  { %3561 = vpow2.f32 %v2710_v4 }
0x14cf   :  { %v3562_v6 = vpop.eup %3561 }
0x14d0   :  { %v2055_v9 = vadd.f32 1.0, %v3562_v6 }
0x14d2   :  { %3563 = vrcp.f32 %v2055_v9 }
0x14dc   :  { %v3564_v10 = vpop.eup %3563 }
0x14dd   :  { %v2058_v23 = vmul.f32 2.0, %v3564_v10  ;;  %v2060_v27 = vmul.f32 %v3564_v10, %v4011_v52 }
0x14df   :  { %v2711_v11 = vadd.f32 -1.0, %v2058_v23 }
0x14e1   :  { %2062 = vrot.lane.b32.xlu0 %v2711_v11, %s3612_s0 }
0x1531   :  { %v2159_v22 = vpop.permute.xlu1 %2158 }
0x1532   :  { %v2161_v14 = vmul.f32 %v3560_v63, %v2159_v22 }
0x1534   :  { %2163 = vrot.lane.b32.xlu1 %v2161_v14, %s3613_s25 }
0x1553   :  { %v2063_v15 = vpop.permute.xlu0 %2062 }
0x1554   :  { %v2065_v16 = vmul.f32 %v3564_v10, %v2063_v15 }
0x1556   :  { %2067 = vrot.lane.b32.xlu0 %v2065_v16, %s3613_s25 }
0x15a6   :  { %v2164_v18 = vpop.permute.xlu1 %2163 }
0x15a7   :  { %v2166_v25 = vadd.f32 %v2164_v18, %v2156_v17 }
0x15a9   :  { %3565 = vtanh.f32 %v2166_v25 }
0x15b3   :  { %v3566_v26 = vpop.eup %3565 }
0x15b4   :  { %2169 = vrot.lane.b32.xlu1 %v3566_v26, %s3612_s0 }
0x15c8   :  { %v2068_v28 = vpop.permute.xlu0 %2067 }
0x15c9   :  { %v2070_v29 = vadd.f32 %v2068_v28, %v2060_v27 }
0x15cb   :  { %3567 = vtanh.f32 %v2070_v29 }
0x15d5   :  { %v3568_v7 = vpop.eup %3567 }
0x15d6   :  { %2073 = vrot.lane.b32.xlu0 %v3568_v7, %s3612_s0 }
0x1626   :  { %v2170_v30 = vpop.permute.xlu1 %2169 }
0x1627   :  { %v2172_v31 = vmul.f32 %v3560_v63, %v2170_v30 }
0x1629   :  { %2249 = vrot.lane.b32.xlu1 %v2172_v31, %s3613_s25 }
0x1648   :  { %v2074_v32 = vpop.permute.xlu0 %2073 }
0x1649   :  { %v2076_v33 = vmul.f32 %v3564_v10, %v2074_v32 }
0x164b   :  { %2174 = vrot.lane.b32.xlu0 %v2076_v33, %s3613_s25 }
0x169b   :  { %v2250_v35 = vpop.permute.xlu1 %2249 }
0x16bd   :  { %v2175_v12 = vpop.permute.xlu0 %2174 }
0x16be   :  { %3178 = vmatmul.mubr.msk.f32.vlgmr.msra.gmra.mrb[24].mxu0 %vm181_vm3, %v2175_v12 }
0x16bf   :  { %3406 = vmatpush3.bf16.msra.mxu0 %v3766_v47  ;;  %3188 = vmatprep.mubr.msk.f32.mxu0 %vm3610_vm2, %v3611_v8 }
0x16c0   :  { %3407 = vmatprep.subr.bf16.mxu0 %v3609_v3 }
0x16c3   :  { %3409 = vmatpush3.bf16.msra.mxu0 %v3778_v51 }
0x16c4   :  { %3434 = vmatprep.subr.bf16.mxu0 %v3609_v3 }
0x16c6   :  { %3189 = vmatmul.mubr.msk.f32.vlgmr.msra.gmra.mrb[24].mxu0 %vm181_vm3, %v2250_v35 }
0x16c7   :  { %3263 = vmatprep.mubr.msk.f32.mxu0 %vm3610_vm2, %v3611_v8 }
0x1799   :  { %v2319_v19 = vpop.f32.mrb[24].mxu0 }
0x179a   :  { %v2717_v24 = vmul.f32 -1.442695, %v2319_v19  ;;  %v3190_v36 = vpop.f32.mrb[25].mxu0 }
0x179c   :  { %3569 = vpow2.f32 %v2717_v24 }
0x17a6   :  { %v3570_v47 = vpop.eup %3569 }
0x17a7   :  { %v2326_v37 = vadd.f32 1.0, %v3570_v47 }
0x17a9   :  { %3571 = vrcp.f32 %v2326_v37 }
0x17b3   :  { %v3572_v39 = vpop.eup %3571 }
0x17b4   :  { %v2329_v40 = vmul.f32 2.0, %v3572_v39  ;;  %v2331_v45 = vmul.f32 %v3572_v39, %v2070_v29 }
0x17b6   :  { %v2718_v41 = vadd.f32 -1.0, %v2329_v40 }
0x17b8   :  { %2333 = vrot.lane.b32.xlu0 %v2718_v41, %s3612_s0 }
0x182a   :  { %v2334_v51 = vpop.permute.xlu0 %2333 }
0x182b   :  { %v2336_v43 = vmul.f32 %v3572_v39, %v2334_v51 }
0x182d   :  { %2338 = vrot.lane.b32.xlu1 %v2336_v43, %s3613_s25 }
0x189f   :  { %v2339_v46 = vpop.permute.xlu1 %2338 }
0x18a0   :  { %v2341_v48 = vadd.f32 %v2339_v46, %v2331_v45  ;;  %v2578_v46 = vld [vmem:[%s4166_s6] sm:$0x1] }
0x18a2   :  { %3573 = vtanh.f32 %v2341_v48 }
0x18ac   :  { %v3574_v8 = vpop.eup %3573 }
0x18ad   :  { %2344 = vrot.lane.b32.xlu0 %v3574_v8, %s3612_s0 }
0x191f   :  { %v2345_v50 = vpop.permute.xlu0 %2344 }
0x1920   :  { %v2347_v52 = vmul.f32 %v3572_v39, %v2345_v50 }
0x1922   :  { %2365 = vrot.lane.b32.xlu1 %v2347_v52, %s3613_s25 }
0x1994   :  { %v2366_v53 = vpop.permute.xlu1 %2365 }
0x1995   :  { %v3428_v54 = vpack.c.bf16 %v2366_v53, %v2175_v12 }
0x1997   :  { %3430 = vmatprep.subr.msk.bf16.mxu1 %vm4031_vm4, %v3428_v54 }
0x1998   :  { %3433 = vmatpush3.bf16.xpose.msk.msra.mxu1 %vm4031_vm4, %v3428_v54 }
0x199f   :  { %3208 = vmatmul.mubr.msk.f32.vlgmr.msra.gmra.mrb[14].mxu1 %vm181_vm3, %v2349_v20 }
0x19a0   :  { %3210 = vmatprep.mubr.msk.f32.mxu1 %vm181_vm3, %v2350_v55 }
0x19a3   :  { %3211 = vmatmul.mubr.msk.f32.gmra.mrb[16].mxu1 %vm181_vm3, %v2351_v56 }
0x19a4   :  { %3213 = vmatprep.mubr.msk.f32.mxu1 %vm181_vm3, %v2352_v21 }
0x19a7   :  { %3214 = vmatmul.mubr.msk.f32.gmra.mrb[18].mxu1 %vm181_vm3, %v2353_v58 }
0x19a8   :  { %3216 = vmatprep.mubr.msk.f32.mxu1 %vm181_vm3, %v2354_v42 }
0x19ab   :  { %3217 = vmatmul.mubr.msk.f32.gmra.mrb[20].mxu1 %vm181_vm3, %v2355_v44 }
0x19ac   :  { %3219 = vmatprep.mubr.msk.f32.mxu1 %vm181_vm3, %v2356_v59 }
0x19af   :  { %3220 = vmatmul.mubr.msk.f32.gmra.mrb[22].mxu1 %vm181_vm3, %v2357_v60 }
0x19b0   :  { %3222 = vmatprep.mubr.msk.f32.mxu1 %vm181_vm3, %v2358_v34 }
0x19b3   :  { %3223 = vmatmul.mubr.msk.f32.gmra.mrb[24].mxu1 %vm181_vm3, %v2359_v13 }
0x19b4   :  { %3225 = vmatprep.mubr.msk.f32.mxu1 %vm181_vm3, %v2360_v57 }
0x19b7   :  { %3226 = vmatmul.mubr.msk.f32.gmra.mrb[26].mxu1 %vm181_vm3, %v2361_v38 }
0x19b8   :  { %3228 = vmatprep.mubr.msk.f32.mxu1 %vm181_vm3, %v2362_v61 }
0x19bb   :  { %3229 = vmatmul.mubr.msk.f32.gmra.mrb[28].mxu1 %vm181_vm3, %v2363_v62 }
0x1a72   :  { %v3209_v63 = vpop.f32.mrb[14].mxu1 }
0x1a73   :  { %3575 = vtanh.f32 %v3209_v63  ;;  %v2483_v0 = vpop.f32.mrb[15].mxu1 }
0x1a74   :  { %3577 = vtanh.f32 %v2483_v0 }
0x1a76   :  { %v3212_v1 = vpop.f32.mrb[16].mxu1 }
0x1a77   :  { %3579 = vtanh.f32 %v3212_v1  ;;  %v2493_v2 = vpop.f32.mrb[17].mxu1 }
0x1a78   :  { %3581 = vtanh.f32 %v2493_v2 }
0x1a7a   :  { %v3215_v4 = vpop.f32.mrb[18].mxu1 }
0x1a7b   :  { %3583 = vtanh.f32 %v3215_v4  ;;  %v2503_v5 = vpop.f32.mrb[19].mxu1 }
0x1a7c   :  { %3585 = vtanh.f32 %v2503_v5 }
0x1a7d   :  { %v3576_v6 = vpop.eup %3575 }
0x1a7e   :  { %v3578_v9 = vpop.eup %3577  ;;  %v3218_v10 = vpop.f32.mrb[20].mxu1 }
0x1a7f   :  { %3587 = vtanh.f32 %v3218_v10  ;;  %v2513_v23 = vpop.f32.mrb[21].mxu1  ;;  %v3435_v11 = vpack.c.bf16 %v3576_v6, %v3578_v9 }
0x1a80   :  { %3589 = vtanh.f32 %v2513_v23 }
0x1a81   :  { %v3580_v22 = vpop.eup %3579  ;;  %3436 = vmatpush3.bf16.msra.mxu0 %v3435_v11 }
0x1a82   :  { %v3582_v14 = vpop.eup %3581  ;;  %v3221_v15 = vpop.f32.mrb[22].mxu1  ;;  %3437 = vmatprep.subr.bf16.mxu0 %v3609_v3 }
0x1a83   :  { %3591 = vtanh.f32 %v3221_v15  ;;  %v2523_v16 = vpop.f32.mrb[23].mxu1  ;;  %v3438_v17 = vpack.c.bf16 %v3580_v22, %v3582_v14 }
0x1a84   :  { %3593 = vtanh.f32 %v2523_v16 }
0x1a85   :  { %v3584_v18 = vpop.eup %3583  ;;  %3439 = vmatpush3.bf16.msra.mxu0 %v3438_v17 }
0x1a86   :  { %v3586_v25 = vpop.eup %3585  ;;  %v3224_v26 = vpop.f32.mrb[24].mxu1  ;;  %3440 = vmatprep.subr.bf16.mxu0 %v3609_v3 }
0x1a87   :  { %3595 = vtanh.f32 %v3224_v26  ;;  %v2533_v27 = vpop.f32.mrb[25].mxu1  ;;  %v3441_v28 = vpack.c.bf16 %v3584_v18, %v3586_v25 }
0x1a88   :  { %3597 = vtanh.f32 %v2533_v27 }
0x1a89   :  { %v3588_v29 = vpop.eup %3587  ;;  %3442 = vmatpush3.bf16.msra.mxu0 %v3441_v28 }
0x1a8a   :  { %v3590_v7 = vpop.eup %3589  ;;  %v3227_v30 = vpop.f32.mrb[26].mxu1  ;;  %3443 = vmatprep.subr.bf16.mxu0 %v3609_v3 }
0x1a8b   :  { %3599 = vtanh.f32 %v3227_v30  ;;  %v2543_v31 = vpop.f32.mrb[27].mxu1  ;;  %v3444_v32 = vpack.c.bf16 %v3588_v29, %v3590_v7 }
0x1a8c   :  { %3601 = vtanh.f32 %v2543_v31 }
0x1a8d   :  { %v3592_v33 = vpop.eup %3591  ;;  %3445 = vmatpush3.bf16.msra.mxu0 %v3444_v32 }
0x1a8e   :  { %v3594_v12 = vpop.eup %3593  ;;  %v3230_v35 = vpop.f32.mrb[28].mxu1  ;;  %3446 = vmatprep.subr.bf16.mxu0 %v3609_v3 }
0x1a8f   :  { %3603 = vtanh.f32 %v3230_v35  ;;  %v2553_v19 = vpop.f32.mrb[29].mxu1  ;;  %v3447_v24 = vpack.c.bf16 %v3592_v33, %v3594_v12 }
0x1a90   :  { %3605 = vtanh.f32 %v2553_v19 }
0x1a91   :  { %v3596_v36 = vpop.eup %3595  ;;  %3448 = vmatpush3.bf16.msra.mxu0 %v3447_v24 }
0x1a92   :  { %v3598_v47 = vpop.eup %3597  ;;  %3449 = vmatprep.subr.bf16.mxu0 %v3609_v3 }
0x1a93   :  { %v3450_v37 = vpack.c.bf16 %v3596_v36, %v3598_v47 }
0x1a95   :  { %v3600_v39 = vpop.eup %3599  ;;  %3451 = vmatpush3.bf16.msra.mxu0 %v3450_v37 }
0x1a96   :  { %v3602_v40 = vpop.eup %3601  ;;  %3452 = vmatprep.subr.bf16.mxu0 %v3609_v3 }
0x1a97   :  { %v3453_v41 = vpack.c.bf16 %v3600_v39, %v3602_v40 }
0x1a99   :  { %v3604_v51 = vpop.eup %3603  ;;  %3454 = vmatpush3.bf16.msra.mxu0 %v3453_v41 }
0x1a9a   :  { %v3606_v43 = vpop.eup %3605  ;;  %3455 = vmatprep.subr.bf16.mxu0 %v3609_v3 }
0x1a9b   :  { %v3456_v45 = vpack.c.bf16 %v3604_v51, %v3606_v43 }
0x1a9d   :  { %3457 = vmatpush3.bf16.msra.mxu0 %v3456_v45 }
0x1aa0   :  { %3264 = vmatmul.mubr.f32.vlgmr.msra.gmra.mrb[26].mxu0 %v2578_v46 }
0x1b73   :  { %v2645_v48 = vpop.f32.mrb[26].mxu0 }
0x1b74   :  { %3607 = vtanh.f32 %v2645_v48  ;;  %v3265_v8 = vpop.f32.mrb[27].mxu0 }
0x1b7e   :  { %v3608_v49 = vpop.eup %3607 }
0x1b7f   :  { %2651 = vst.msk [vmem:[%s4167_s7] sm:$0x1] %vm2650_vm5, %v3608_v49 }

</bundles_post_ra>
